<compile_context>
chip_gen: v7x
topology: tpu7x:2x2x1
jax: 0.10.0
libtpu: 0.0.40
codegen_flags: <defaults>
</compile_context>

<pallas_src>
import functools

import jax
import jax.numpy as jnp
from jax import lax
from jax.experimental import pallas as pl
from jax.experimental.pallas import tpu as pltpu

_HIGHEST = jax.lax.Precision.HIGHEST
_DEFAULT = jax.lax.Precision.DEFAULT


def _sigmoid(x):
    # Same formulation in kernel and reference for exact numerical parity.
    # (For very negative x this makes an inf intermediate but a correct 0.0.)
    return 1.0 / (1.0 + jnp.exp(-x))


# --------------------------------------------------------------------------
# Pallas kernel: one LSTM layer + LayerNorm over a (T, TB, D) batch tile.
# --------------------------------------------------------------------------
def _lstm_ln_layer_kernel(x_ref, wih_ref, whh_ref, b_ref, gamma_ref, beta_ref,
                          o_ref, proj_ref, hbuf_ref, *, eps, precision, unroll):
    T, TB, D = x_ref.shape
    H = whh_ref.shape[0]
    G = 4 * H
    rows = T * TB

    # Parameters: loaded once per grid step, hoisted out of every loop below.
    wih = wih_ref[...]          # (D, 4H)  == W_ih^T  (gate axis lane-dense)
    whh = whh_ref[...]          # (H, 4H)  == W_hh^T
    b = b_ref[...]              # (1, 4H)  == b_ih + b_hh
    gamma = gamma_ref[...]      # (1, H)
    beta = beta_ref[...]        # (1, H)

    # ---- 1) Input projection, hoisted off the serial recurrence. ----------
    if TB % 8 == 0 and rows <= 512:
        # One large MXU matmul for the whole tile; the (T,TB,*)<->(T*TB,*)
        # reshapes are sublane-tile aligned (TB % 8 == 0) and therefore free.
        x_all = x_ref[...].reshape(rows, D)
        proj = jnp.dot(x_all, wih, preferred_element_type=jnp.float32,
                       precision=precision)
        proj_ref[...] = (proj + b).reshape(T, TB, G)
    else:
        # Per-timestep matmuls, but independent of each other and of the h/c
        # chain, so they pipeline freely on the MXU.
        def proj_step(t, carry):
            proj_ref[t] = (jnp.dot(x_ref[t], wih,
                                   preferred_element_type=jnp.float32,
                                   precision=precision) + b)
            return carry
        lax.fori_loop(0, T, proj_step, 0, unroll=unroll)

    # ---- 2) Serial recurrence: only proj[t] + h @ W_hh + gate math. -------
    def step(t, carry):
        h, c = carry                                          # (TB, H) f32 each
        gates = proj_ref[t] + jnp.dot(h, whh,
                                      preferred_element_type=jnp.float32,
                                      precision=precision)    # (TB, 4H)
        # One full-width sigmoid and one full-width tanh over all 4H gate
        # lanes (2 EUP pushes instead of 4 quarter-width ones).  PyTorch gate
        # order along the 4H axis: i, f, g, o.
        sig = _sigmoid(gates)
        tnh = jnp.tanh(gates)
        i_g = sig[:, 0 * H:1 * H]
        f_g = sig[:, 1 * H:2 * H]
        g_g = tnh[:, 2 * H:3 * H]
        o_g = sig[:, 3 * H:4 * H]
        # TODO(synk): with H=32, pack 4 batch rows into the 128-lane axis (and a
        # block-diagonal W_hh) so the gate/state math runs at full lane
        # utilization instead of 25%.
        c_new = f_g * c + i_g * g_g
        h_new = o_g * jnp.tanh(c_new)
        hbuf_ref[t] = h_new          # raw hidden state; LayerNorm is deferred
        return h_new, c_new

    h0 = jnp.zeros((TB, H), jnp.float32)
    c0 = jnp.zeros((TB, H), jnp.float32)
    lax.fori_loop(0, T, step, (h0, c0), unroll=unroll)

    # ---- 3) Deferred LayerNorm + store epilogue (off the recurrence). -----
    def layer_norm(hs):
        mu = jnp.mean(hs, axis=-1, keepdims=True)
        dev = hs - mu
        var = jnp.mean(dev * dev, axis=-1, keepdims=True)  # biased, like nn.LayerNorm
        return (dev * lax.rsqrt(var + eps) * gamma + beta).astype(o_ref.dtype)

    if rows <= 256:
        # Small tile: one vectorized LayerNorm over the whole block + bulk store.
        o_ref[...] = layer_norm(hbuf_ref[...])
        # TODO(synk): for H < 128, repack 4 batch rows per 128-lane store here
        # (lane-dense (T, TB//4, 4H) output view) so the stores are full-lane
        # vst instead of masked vst.msk.
    else:
        # Large tile: chunk over time to keep the live set within the vreg file;
        # iterations are independent and pipeline under unroll.
        def ln_step(t, carry):
            o_ref[t] = layer_norm(hbuf_ref[t])
            return carry
        lax.fori_loop(0, T, ln_step, 0, unroll=unroll)


# --------------------------------------------------------------------------
# Tiling helpers + wrapper
# --------------------------------------------------------------------------
def _layer_vmem_bytes(T, tb, D, H):
    """Estimated per-grid-step VMEM footprint for one layer."""
    x_io = 2 * T * tb * D * 4             # double-buffered input block
    o_io = 2 * T * tb * H * 4             # double-buffered output block
    scratch = T * tb * (4 * H + H) * 4    # hoisted projection + raw-hidden scratch
    params = 2 * (D * 4 * H + H * 4 * H + 4 * H + 2 * H) * 4
    return x_io + o_io + scratch + params


_VMEM_BUDGET_BYTES = 48 * 1024 * 1024     # conservative: fits v7x's 64 MiB/TC


def _pick_batch_tile(B, T, D, H):
    """Sublane-aligned, vreg- and VMEM-aware batch tile."""
    if B % 8 != 0:
        # TODO(synk): pad to the next multiple of 8 with in-kernel row masking so
        # small/odd batches still yield >=2 grid steps for v7x's two TensorCores.
        return B
    tb = 8
    # Cap at 64 rows: every live (tb, H<=128) f32 tensor costs tb/8 lane-padded
    # vregs, so bigger tiles spill inside the serial loop.  Keep >=2 grid steps
    # when the batch allows (pipelining / v7x TC sharding) and respect VMEM.
    while (tb * 2 <= min(B // 2, 64) and B % (tb * 2) == 0
           and _layer_vmem_bytes(T, tb * 2, D, H) <= _VMEM_BUDGET_BYTES):
        tb *= 2
    return tb


def _lstm_ln_layer(x_tbd: jax.Array, p: dict, *, eps: float,
                   precision) -> jax.Array:
    """x_tbd: (T, B, D) time-major input. Returns (T, B, H)."""
    T, B, D = x_tbd.shape
    H = p["w_hh"].shape[1]
    wih = jnp.transpose(p["w_ih"])                     # (D, 4H)
    whh = jnp.transpose(p["w_hh"])                     # (H, 4H)
    b = (p["b_ih"] + p["b_hh"]).reshape(1, 4 * H)
    gamma = p["gamma"].reshape(1, H)
    beta = p["beta"].reshape(1, H)

    tb = _pick_batch_tile(B, T, D, H)
    grid = (B // tb,)
    unroll = T if T <= 16 else 4
    vmem_limit = int(min(_VMEM_BUDGET_BYTES,
                         max(32 * 1024 * 1024,
                             1.25 * _layer_vmem_bytes(T, tb, D, H))))
    # TODO(synk): for very long sequences (footprint over budget even at tb=8),
    # time-chunk x/out with pltpu.emit_pipeline, carrying (h, c) in VMEM scratch
    # across chunks, instead of spanning the whole T per block.

    return pl.pallas_call(
        functools.partial(_lstm_ln_layer_kernel, eps=eps, precision=precision,
                          unroll=unroll),
        out_shape=jax.ShapeDtypeStruct((T, B, H), x_tbd.dtype),
        grid_spec=pltpu.PrefetchScalarGridSpec(
            num_scalar_prefetch=0,
            grid=grid,
            in_specs=[
                pl.BlockSpec((T, tb, D), lambda i: (0, i, 0)),   # x batch tile
                pl.BlockSpec((D, 4 * H), lambda i: (0, 0)),      # W_ih^T
                pl.BlockSpec((H, 4 * H), lambda i: (0, 0)),      # W_hh^T
                pl.BlockSpec((1, 4 * H), lambda i: (0, 0)),      # b_ih + b_hh
                pl.BlockSpec((1, H), lambda i: (0, 0)),          # gamma
                pl.BlockSpec((1, H), lambda i: (0, 0)),          # beta
            ],
            out_specs=pl.BlockSpec((T, tb, H), lambda i: (0, i, 0)),
            scratch_shapes=[
                pltpu.VMEM((T, tb, 4 * H), jnp.float32),  # hoisted input projection
                pltpu.VMEM((T, tb, H), jnp.float32),      # raw hidden states for LN
            ],
        ),
        compiler_params=pltpu.CompilerParams(
            dimension_semantics=("parallel",),
            vmem_limit_bytes=vmem_limit,
        ),
    )(x_tbd, wih, whh, b, gamma, beta)


def layer_norm_lstm(x: jax.Array, layers, *, eps: float = 1e-5,
                    precision=_DEFAULT) -> jax.Array:
    """Full LayerNormLSTM forward. x: (B, T, input_size), batch-first."""
    out = jnp.transpose(x, (1, 0, 2))          # time-major once for all layers
    for p in layers:
        out = _lstm_ln_layer(out, p, eps=eps, precision=precision)
    return jnp.transpose(out, (1, 0, 2))       # (B, T, H)


# --------------------------------------------------------------------------
# Parameters (PyTorch layout) and pure-JAX reference
# --------------------------------------------------------------------------
def init_params(key, input_size: int, hidden_size: int, num_layers: int):
    layers = []
    scale = 0.5
    for i in range(num_layers):
        d_in = input_size if i == 0 else hidden_size
        key, k1, k2, k3, k4, k5, k6 = jax.random.split(key, 7)
        layers.append(dict(
            w_ih=jax.random.uniform(k1, (4 * hidden_size, d_in), jnp.float32,
                                    -scale, scale),
            w_hh=jax.random.uniform(k2, (4 * hidden_size, hidden_size),
                                    jnp.float32, -scale, scale),
            b_ih=jax.random.uniform(k3, (4 * hidden_size,), jnp.float32,
                                    -scale, scale),
            b_hh=jax.random.uniform(k4, (4 * hidden_size,), jnp.float32,
                                    -scale, scale),
            gamma=1.0 + 0.1 * jax.random.normal(k5, (hidden_size,), jnp.float32),
            beta=0.1 * jax.random.normal(k6, (hidden_size,), jnp.float32),
        ))
    return layers


def _reference_layer(x, p, eps, precision):
    B, T, _ = x.shape
    H = p["w_hh"].shape[1]
    w_ih_t = p["w_ih"].T
    w_hh_t = p["w_hh"].T
    b = p["b_ih"] + p["b_hh"]

    def cell(carry, x_t):
        h, c = carry
        gates = (jnp.dot(x_t, w_ih_t, precision=precision)
                 + jnp.dot(h, w_hh_t, precision=precision) + b)
        i_g = _sigmoid(gates[:, 0 * H:1 * H])
        f_g = _sigmoid(gates[:, 1 * H:2 * H])
        g_g = jnp.tanh(gates[:, 2 * H:3 * H])
        o_g = _sigmoid(gates[:, 3 * H:4 * H])
        c = f_g * c + i_g * g_g
        h = o_g * jnp.tanh(c)
        return (h, c), h

    h0 = jnp.zeros((B, H), jnp.float32)
    c0 = jnp.zeros((B, H), jnp.float32)
    _, hs = lax.scan(cell, (h0, c0), jnp.transpose(x, (1, 0, 2)))
    hs = jnp.transpose(hs, (1, 0, 2))                  # (B, T, H)
    mu = jnp.mean(hs, axis=-1, keepdims=True)
    var = jnp.mean((hs - mu) ** 2, axis=-1, keepdims=True)
    return (hs - mu) * lax.rsqrt(var + eps) * p["gamma"] + p["beta"]


def layer_norm_lstm_reference(x, layers, *, eps: float = 1e-5,
                              precision=_HIGHEST):
    out = x
    for p in layers:
        out = _reference_layer(out, p, eps, precision)
    return out


# --------------------------------------------------------------------------
if __name__ == "__main__":
    EPS = 1e-5
    key = jax.random.PRNGKey(0)

    # Small configs exercising the fused (8-aligned batch) path, the odd-batch
    # per-timestep fallback, and the longer-sequence chunked epilogue path.
    configs = [
        dict(B=8, T=8, D=16, H=32, L=2),     # fused projection + fused LN epilogue
        dict(B=2, T=8, D=16, H=32, L=2),     # odd batch -> per-timestep projection
        dict(B=4, T=96, D=16, H=32, L=1),    # long T -> chunked LN, partial unroll
    ]

    for cfg in configs:
        key, kx, kp = jax.random.split(key, 3)
        x = jax.random.normal(kx, (cfg["B"], cfg["T"], cfg["D"]), dtype=jnp.float32)
        params = init_params(kp, cfg["D"], cfg["H"], cfg["L"])

        # Performance configuration: DEFAULT MXU precision (bf16 inputs, f32
        # accumulation) -- prove it compiles, runs and stays finite.
        fwd_fast = jax.jit(functools.partial(layer_norm_lstm, eps=EPS))
        y_fast = jax.block_until_ready(fwd_fast(x, params))
        assert y_fast.shape == (cfg["B"], cfg["T"], cfg["H"])
        assert y_fast.dtype == x.dtype
        assert bool(jnp.all(jnp.isfinite(y_fast))), f"{cfg}: non-finite output"

        # Numerics check at matched (HIGHEST) MXU precision against the pure-JAX
        # reference -- tight, deterministic tolerance.
        fwd_hi = jax.jit(functools.partial(layer_norm_lstm, eps=EPS,
                                           precision=_HIGHEST))
        y_hi = jax.block_until_ready(fwd_hi(x, params))
        y_ref = layer_norm_lstm_reference(x, params, eps=EPS, precision=_HIGHEST)
        err_hi = float(jnp.max(jnp.abs(y_hi - y_ref)))
        assert err_hi < 2e-3, f"{cfg}: mismatch vs reference (HIGHEST): {err_hi}"

        # Coarse sanity bound on the fast path (bf16 MXU rounding is amplified
        # by the recurrence, LayerNorm and layer stacking).
        err_fast = float(jnp.max(jnp.abs(y_fast - y_ref)))
        assert err_fast < 1.0, f"{cfg}: fast path diverged: {err_fast}"

    print("KERNEL_OK")
</pallas_src>

<mosaic_0001>
module attributes {stable_mosaic.version = 11 : i64} {
  func.func @_lstm_ln_layer_kernel(%arg0: i32, %arg1: memref<8x8x32xf32, #tpu.memory_space<vmem>>, %arg2: memref<32x128xf32, #tpu.memory_space<vmem>>, %arg3: memref<32x128xf32, #tpu.memory_space<vmem>>, %arg4: memref<1x128xf32, #tpu.memory_space<vmem>>, %arg5: memref<1x32xf32, #tpu.memory_space<vmem>>, %arg6: memref<1x32xf32, #tpu.memory_space<vmem>>, %arg7: memref<8x8x32xf32, #tpu.memory_space<vmem>>, %arg8: memref<8x8x128xf32, #tpu.memory_space<vmem>>, %arg9: memref<8x8x32xf32, #tpu.memory_space<vmem>>) attributes {dimension_semantics = [#tpu.dimension_semantics<parallel>], iteration_bounds = array<i64: 1>, scalar_prefetch = 0 : i64, scratch_operands = 2 : i64, tpu.core_type = #tpu.core_type<tc>, window_params = [{transform_indices = @transform_0, window_bounds = array<i64: 8, 8, 32>}, {pipeline_mode = #tpu.pipeline_mode<synchronous>, transform_indices = @transform_1, window_bounds = array<i64: 32, 128>}, {pipeline_mode = #tpu.pipeline_mode<synchronous>, transform_indices = @transform_2, window_bounds = array<i64: 32, 128>}, {pipeline_mode = #tpu.pipeline_mode<synchronous>, transform_indices = @transform_3, window_bounds = array<i64: 1, 128>}, {pipeline_mode = #tpu.pipeline_mode<synchronous>, transform_indices = @transform_4, window_bounds = array<i64: 1, 32>}, {pipeline_mode = #tpu.pipeline_mode<synchronous>, transform_indices = @transform_5, window_bounds = array<i64: 1, 32>}, {transform_indices = @transform_6, window_bounds = array<i64: 8, 8, 32>}]} {
    %c0 = arith.constant 0 : index
    %c0_0 = arith.constant 0 : index
    %0 = vector.load %arg2[%c0, %c0_0] : memref<32x128xf32, #tpu.memory_space<vmem>>, vector<32x128xf32>
    %c0_1 = arith.constant 0 : index
    %c0_2 = arith.constant 0 : index
    %1 = vector.load %arg3[%c0_1, %c0_2] : memref<32x128xf32, #tpu.memory_space<vmem>>, vector<32x128xf32>
    %c0_3 = arith.constant 0 : index
    %c0_4 = arith.constant 0 : index
    %2 = vector.load %arg4[%c0_3, %c0_4] : memref<1x128xf32, #tpu.memory_space<vmem>>, vector<1x128xf32>
    %c0_5 = arith.constant 0 : index
    %c0_6 = arith.constant 0 : index
    %3 = vector.load %arg5[%c0_5, %c0_6] : memref<1x32xf32, #tpu.memory_space<vmem>>, vector<1x32xf32>
    %c0_7 = arith.constant 0 : index
    %c0_8 = arith.constant 0 : index
    %4 = vector.load %arg6[%c0_7, %c0_8] : memref<1x32xf32, #tpu.memory_space<vmem>>, vector<1x32xf32>
    %c0_9 = arith.constant 0 : index
    %c0_10 = arith.constant 0 : index
    %c0_11 = arith.constant 0 : index
    %5 = vector.load %arg1[%c0_9, %c0_10, %c0_11] : memref<8x8x32xf32, #tpu.memory_space<vmem>>, vector<8x8x32xf32>
    %6 = vector.shape_cast %5 : vector<8x8x32xf32> to vector<64x32xf32>
    %cst = arith.constant dense<0.000000e+00> : vector<64x128xf32>
    %7 = tpu.matmul %6, %0, %cst {dimension_numbers = #tpu.dot_dimension_numbers<[1], [0], [0], [1], [0, 0, 1, 1], [], []>} : vector<64x32xf32>, vector<32x128xf32>, vector<64x128xf32> -> vector<64x128xf32>
    %8 = vector.broadcast %2 : vector<1x128xf32> to vector<64x128xf32>
    %9 = arith.addf %7, %8 : vector<64x128xf32>
    %10 = vector.shape_cast %9 : vector<64x128xf32> to vector<8x8x128xf32>
    %c0_12 = arith.constant 0 : index
    %c0_13 = arith.constant 0 : index
    %c0_14 = arith.constant 0 : index
    %11 = vector.load %arg8[%c0_12, %c0_13, %c0_14] : memref<8x8x128xf32, #tpu.memory_space<vmem>>, vector<8x8x128xf32>
    tpu.vector_store %arg8[%c0_12, %c0_13, %c0_14], %10 {strides = array<i32>} : memref<8x8x128xf32, #tpu.memory_space<vmem>>, vector<8x8x128xf32>,
    %cst_15 = arith.constant 0.000000e+00 : f32
    %12 = vector.broadcast %cst_15 : f32 to vector<8x32xf32>
    %cst_16 = arith.constant 0.000000e+00 : f32
    %13 = vector.broadcast %cst_16 : f32 to vector<8x32xf32>
    %c0_i32 = arith.constant 0 : i32
    %14 = arith.index_cast %c0_i32 : i32 to index
    %c0_17 = arith.constant 0 : index
    %c0_18 = arith.constant 0 : index
    %15 = vector.load %arg8[%14, %c0_17, %c0_18] : memref<8x8x128xf32, #tpu.memory_space<vmem>>, vector<1x8x128xf32>
    %16 = vector.shape_cast %15 : vector<1x8x128xf32> to vector<8x128xf32>
    %cst_19 = arith.constant dense<0.000000e+00> : vector<8x128xf32>
    %17 = tpu.matmul %12, %1, %cst_19 {dimension_numbers = #tpu.dot_dimension_numbers<[1], [0], [0], [1], [0, 0, 1, 1], [], []>} : vector<8x32xf32>, vector<32x128xf32>, vector<8x128xf32> -> vector<8x128xf32>
    %18 = arith.addf %16, %17 : vector<8x128xf32>
    %cst_20 = arith.constant 0.000000e+00 : f32
    %19 = vector.broadcast %cst_20 : f32 to vector<8x128xf32>
    %20 = arith.subf %19, %18 : vector<8x128xf32>
    %21 = math.exp %20 : vector<8x128xf32>
    %cst_21 = arith.constant 1.000000e+00 : f32
    %22 = vector.broadcast %cst_21 : f32 to vector<8x128xf32>
    %23 = arith.addf %22, %21 : vector<8x128xf32>
    %cst_22 = arith.constant 1.000000e+00 : f32
    %24 = vector.broadcast %cst_22 : f32 to vector<8x128xf32>
    %25 = arith.divf %24, %23 : vector<8x128xf32>
    %26 = math.tanh %18 : vector<8x128xf32>
    %27 = vector.extract_strided_slice %25 {offsets = [0, 0], sizes = [8, 32], strides = [1, 1]} : vector<8x128xf32> to vector<8x32xf32>
    %28 = vector.extract_strided_slice %25 {offsets = [0, 32], sizes = [8, 32], strides = [1, 1]} : vector<8x128xf32> to vector<8x32xf32>
    %29 = vector.extract_strided_slice %26 {offsets = [0, 64], sizes = [8, 32], strides = [1, 1]} : vector<8x128xf32> to vector<8x32xf32>
    %30 = vector.extract_strided_slice %25 {offsets = [0, 96], sizes = [8, 32], strides = [1, 1]} : vector<8x128xf32> to vector<8x32xf32>
    %31 = arith.mulf %28, %13 : vector<8x32xf32>
    %32 = arith.mulf %27, %29 : vector<8x32xf32>
    %33 = arith.addf %31, %32 : vector<8x32xf32>
    %34 = math.tanh %33 : vector<8x32xf32>
    %35 = arith.mulf %30, %34 : vector<8x32xf32>
    %36 = arith.index_cast %c0_i32 : i32 to index
    %c0_23 = arith.constant 0 : index
    %c0_24 = arith.constant 0 : index
    %37 = vector.load %arg9[%36, %c0_23, %c0_24] : memref<8x8x32xf32, #tpu.memory_space<vmem>>, vector<1x8x32xf32>
    %38 = vector.shape_cast %37 : vector<1x8x32xf32> to vector<8x32xf32>
    %39 = vector.shape_cast %35 : vector<8x32xf32> to vector<1x8x32xf32>
    tpu.vector_store %arg9[%36, %c0_23, %c0_24], %39 {strides = array<i32>} : memref<8x8x32xf32, #tpu.memory_space<vmem>>, vector<1x8x32xf32>,
    %c1_i32 = arith.constant 1 : i32
    %40 = arith.index_cast %c1_i32 : i32 to index
    %c0_25 = arith.constant 0 : index
    %c0_26 = arith.constant 0 : index
    %41 = vector.load %arg8[%40, %c0_25, %c0_26] : memref<8x8x128xf32, #tpu.memory_space<vmem>>, vector<1x8x128xf32>
    %42 = vector.shape_cast %41 : vector<1x8x128xf32> to vector<8x128xf32>
    %cst_27 = arith.constant dense<0.000000e+00> : vector<8x128xf32>
    %43 = tpu.matmul %35, %1, %cst_27 {dimension_numbers = #tpu.dot_dimension_numbers<[1], [0], [0], [1], [0, 0, 1, 1], [], []>} : vector<8x32xf32>, vector<32x128xf32>, vector<8x128xf32> -> vector<8x128xf32>
    %44 = arith.addf %42, %43 : vector<8x128xf32>
    %cst_28 = arith.constant 0.000000e+00 : f32
    %45 = vector.broadcast %cst_28 : f32 to vector<8x128xf32>
    %46 = arith.subf %45, %44 : vector<8x128xf32>
    %47 = math.exp %46 : vector<8x128xf32>
    %cst_29 = arith.constant 1.000000e+00 : f32
    %48 = vector.broadcast %cst_29 : f32 to vector<8x128xf32>
    %49 = arith.addf %48, %47 : vector<8x128xf32>
    %cst_30 = arith.constant 1.000000e+00 : f32
    %50 = vector.broadcast %cst_30 : f32 to vector<8x128xf32>
    %51 = arith.divf %50, %49 : vector<8x128xf32>
    %52 = math.tanh %44 : vector<8x128xf32>
    %53 = vector.extract_strided_slice %51 {offsets = [0, 0], sizes = [8, 32], strides = [1, 1]} : vector<8x128xf32> to vector<8x32xf32>
    %54 = vector.extract_strided_slice %51 {offsets = [0, 32], sizes = [8, 32], strides = [1, 1]} : vector<8x128xf32> to vector<8x32xf32>
    %55 = vector.extract_strided_slice %52 {offsets = [0, 64], sizes = [8, 32], strides = [1, 1]} : vector<8x128xf32> to vector<8x32xf32>
    %56 = vector.extract_strided_slice %51 {offsets = [0, 96], sizes = [8, 32], strides = [1, 1]} : vector<8x128xf32> to vector<8x32xf32>
    %57 = arith.mulf %54, %33 : vector<8x32xf32>
    %58 = arith.mulf %53, %55 : vector<8x32xf32>
    %59 = arith.addf %57, %58 : vector<8x32xf32>
    %60 = math.tanh %59 : vector<8x32xf32>
    %61 = arith.mulf %56, %60 : vector<8x32xf32>
    %62 = arith.index_cast %c1_i32 : i32 to index
    %c0_31 = arith.constant 0 : index
    %c0_32 = arith.constant 0 : index
    %63 = vector.load %arg9[%62, %c0_31, %c0_32] : memref<8x8x32xf32, #tpu.memory_space<vmem>>, vector<1x8x32xf32>
    %64 = vector.shape_cast %63 : vector<1x8x32xf32> to vector<8x32xf32>
    %65 = vector.shape_cast %61 : vector<8x32xf32> to vector<1x8x32xf32>
    tpu.vector_store %arg9[%62, %c0_31, %c0_32], %65 {strides = array<i32>} : memref<8x8x32xf32, #tpu.memory_space<vmem>>, vector<1x8x32xf32>,
    %c2_i32 = arith.constant 2 : i32
    %66 = arith.index_cast %c2_i32 : i32 to index
    %c0_33 = arith.constant 0 : index
    %c0_34 = arith.constant 0 : index
    %67 = vector.load %arg8[%66, %c0_33, %c0_34] : memref<8x8x128xf32, #tpu.memory_space<vmem>>, vector<1x8x128xf32>
    %68 = vector.shape_cast %67 : vector<1x8x128xf32> to vector<8x128xf32>
    %cst_35 = arith.constant dense<0.000000e+00> : vector<8x128xf32>
    %69 = tpu.matmul %61, %1, %cst_35 {dimension_numbers = #tpu.dot_dimension_numbers<[1], [0], [0], [1], [0, 0, 1, 1], [], []>} : vector<8x32xf32>, vector<32x128xf32>, vector<8x128xf32> -> vector<8x128xf32>
    %70 = arith.addf %68, %69 : vector<8x128xf32>
    %cst_36 = arith.constant 0.000000e+00 : f32
    %71 = vector.broadcast %cst_36 : f32 to vector<8x128xf32>
    %72 = arith.subf %71, %70 : vector<8x128xf32>
    %73 = math.exp %72 : vector<8x128xf32>
    %cst_37 = arith.constant 1.000000e+00 : f32
    %74 = vector.broadcast %cst_37 : f32 to vector<8x128xf32>
    %75 = arith.addf %74, %73 : vector<8x128xf32>
    %cst_38 = arith.constant 1.000000e+00 : f32
    %76 = vector.broadcast %cst_38 : f32 to vector<8x128xf32>
    %77 = arith.divf %76, %75 : vector<8x128xf32>
    %78 = math.tanh %70 : vector<8x128xf32>
    %79 = vector.extract_strided_slice %77 {offsets = [0, 0], sizes = [8, 32], strides = [1, 1]} : vector<8x128xf32> to vector<8x32xf32>
    %80 = vector.extract_strided_slice %77 {offsets = [0, 32], sizes = [8, 32], strides = [1, 1]} : vector<8x128xf32> to vector<8x32xf32>
    %81 = vector.extract_strided_slice %78 {offsets = [0, 64], sizes = [8, 32], strides = [1, 1]} : vector<8x128xf32> to vector<8x32xf32>
    %82 = vector.extract_strided_slice %77 {offsets = [0, 96], sizes = [8, 32], strides = [1, 1]} : vector<8x128xf32> to vector<8x32xf32>
    %83 = arith.mulf %80, %59 : vector<8x32xf32>
    %84 = arith.mulf %79, %81 : vector<8x32xf32>
    %85 = arith.addf %83, %84 : vector<8x32xf32>
    %86 = math.tanh %85 : vector<8x32xf32>
    %87 = arith.mulf %82, %86 : vector<8x32xf32>
    %88 = arith.index_cast %c2_i32 : i32 to index
    %c0_39 = arith.constant 0 : index
    %c0_40 = arith.constant 0 : index
    %89 = vector.load %arg9[%88, %c0_39, %c0_40] : memref<8x8x32xf32, #tpu.memory_space<vmem>>, vector<1x8x32xf32>
    %90 = vector.shape_cast %89 : vector<1x8x32xf32> to vector<8x32xf32>
    %91 = vector.shape_cast %87 : vector<8x32xf32> to vector<1x8x32xf32>
    tpu.vector_store %arg9[%88, %c0_39, %c0_40], %91 {strides = array<i32>} : memref<8x8x32xf32, #tpu.memory_space<vmem>>, vector<1x8x32xf32>,
    %c3_i32 = arith.constant 3 : i32
    %92 = arith.index_cast %c3_i32 : i32 to index
    %c0_41 = arith.constant 0 : index
    %c0_42 = arith.constant 0 : index
    %93 = vector.load %arg8[%92, %c0_41, %c0_42] : memref<8x8x128xf32, #tpu.memory_space<vmem>>, vector<1x8x128xf32>
    %94 = vector.shape_cast %93 : vector<1x8x128xf32> to vector<8x128xf32>
    %cst_43 = arith.constant dense<0.000000e+00> : vector<8x128xf32>
    %95 = tpu.matmul %87, %1, %cst_43 {dimension_numbers = #tpu.dot_dimension_numbers<[1], [0], [0], [1], [0, 0, 1, 1], [], []>} : vector<8x32xf32>, vector<32x128xf32>, vector<8x128xf32> -> vector<8x128xf32>
    %96 = arith.addf %94, %95 : vector<8x128xf32>
    %cst_44 = arith.constant 0.000000e+00 : f32
    %97 = vector.broadcast %cst_44 : f32 to vector<8x128xf32>
    %98 = arith.subf %97, %96 : vector<8x128xf32>
    %99 = math.exp %98 : vector<8x128xf32>
    %cst_45 = arith.constant 1.000000e+00 : f32
    %100 = vector.broadcast %cst_45 : f32 to vector<8x128xf32>
    %101 = arith.addf %100, %99 : vector<8x128xf32>
    %cst_46 = arith.constant 1.000000e+00 : f32
    %102 = vector.broadcast %cst_46 : f32 to vector<8x128xf32>
    %103 = arith.divf %102, %101 : vector<8x128xf32>
    %104 = math.tanh %96 : vector<8x128xf32>
    %105 = vector.extract_strided_slice %103 {offsets = [0, 0], sizes = [8, 32], strides = [1, 1]} : vector<8x128xf32> to vector<8x32xf32>
    %106 = vector.extract_strided_slice %103 {offsets = [0, 32], sizes = [8, 32], strides = [1, 1]} : vector<8x128xf32> to vector<8x32xf32>
    %107 = vector.extract_strided_slice %104 {offsets = [0, 64], sizes = [8, 32], strides = [1, 1]} : vector<8x128xf32> to vector<8x32xf32>
    %108 = vector.extract_strided_slice %103 {offsets = [0, 96], sizes = [8, 32], strides = [1, 1]} : vector<8x128xf32> to vector<8x32xf32>
    %109 = arith.mulf %106, %85 : vector<8x32xf32>
    %110 = arith.mulf %105, %107 : vector<8x32xf32>
    %111 = arith.addf %109, %110 : vector<8x32xf32>
    %112 = math.tanh %111 : vector<8x32xf32>
    %113 = arith.mulf %108, %112 : vector<8x32xf32>
    %114 = arith.index_cast %c3_i32 : i32 to index
    %c0_47 = arith.constant 0 : index
    %c0_48 = arith.constant 0 : index
    %115 = vector.load %arg9[%114, %c0_47, %c0_48] : memref<8x8x32xf32, #tpu.memory_space<vmem>>, vector<1x8x32xf32>
    %116 = vector.shape_cast %115 : vector<1x8x32xf32> to vector<8x32xf32>
    %117 = vector.shape_cast %113 : vector<8x32xf32> to vector<1x8x32xf32>
    tpu.vector_store %arg9[%114, %c0_47, %c0_48], %117 {strides = array<i32>} : memref<8x8x32xf32, #tpu.memory_space<vmem>>, vector<1x8x32xf32>,
    %c4_i32 = arith.constant 4 : i32
    %118 = arith.index_cast %c4_i32 : i32 to index
    %c0_49 = arith.constant 0 : index
    %c0_50 = arith.constant 0 : index
    %119 = vector.load %arg8[%118, %c0_49, %c0_50] : memref<8x8x128xf32, #tpu.memory_space<vmem>>, vector<1x8x128xf32>
    %120 = vector.shape_cast %119 : vector<1x8x128xf32> to vector<8x128xf32>
    %cst_51 = arith.constant dense<0.000000e+00> : vector<8x128xf32>
    %121 = tpu.matmul %113, %1, %cst_51 {dimension_numbers = #tpu.dot_dimension_numbers<[1], [0], [0], [1], [0, 0, 1, 1], [], []>} : vector<8x32xf32>, vector<32x128xf32>, vector<8x128xf32> -> vector<8x128xf32>
    %122 = arith.addf %120, %121 : vector<8x128xf32>
    %cst_52 = arith.constant 0.000000e+00 : f32
    %123 = vector.broadcast %cst_52 : f32 to vector<8x128xf32>
    %124 = arith.subf %123, %122 : vector<8x128xf32>
    %125 = math.exp %124 : vector<8x128xf32>
    %cst_53 = arith.constant 1.000000e+00 : f32
    %126 = vector.broadcast %cst_53 : f32 to vector<8x128xf32>
    %127 = arith.addf %126, %125 : vector<8x128xf32>
    %cst_54 = arith.constant 1.000000e+00 : f32
    %128 = vector.broadcast %cst_54 : f32 to vector<8x128xf32>
    %129 = arith.divf %128, %127 : vector<8x128xf32>
    %130 = math.tanh %122 : vector<8x128xf32>
    %131 = vector.extract_strided_slice %129 {offsets = [0, 0], sizes = [8, 32], strides = [1, 1]} : vector<8x128xf32> to vector<8x32xf32>
    %132 = vector.extract_strided_slice %129 {offsets = [0, 32], sizes = [8, 32], strides = [1, 1]} : vector<8x128xf32> to vector<8x32xf32>
    %133 = vector.extract_strided_slice %130 {offsets = [0, 64], sizes = [8, 32], strides = [1, 1]} : vector<8x128xf32> to vector<8x32xf32>
    %134 = vector.extract_strided_slice %129 {offsets = [0, 96], sizes = [8, 32], strides = [1, 1]} : vector<8x128xf32> to vector<8x32xf32>
    %135 = arith.mulf %132, %111 : vector<8x32xf32>
    %136 = arith.mulf %131, %133 : vector<8x32xf32>
    %137 = arith.addf %135, %136 : vector<8x32xf32>
    %138 = math.tanh %137 : vector<8x32xf32>
    %139 = arith.mulf %134, %138 : vector<8x32xf32>
    %140 = arith.index_cast %c4_i32 : i32 to index
    %c0_55 = arith.constant 0 : index
    %c0_56 = arith.constant 0 : index
    %141 = vector.load %arg9[%140, %c0_55, %c0_56] : memref<8x8x32xf32, #tpu.memory_space<vmem>>, vector<1x8x32xf32>
    %142 = vector.shape_cast %141 : vector<1x8x32xf32> to vector<8x32xf32>
    %143 = vector.shape_cast %139 : vector<8x32xf32> to vector<1x8x32xf32>
    tpu.vector_store %arg9[%140, %c0_55, %c0_56], %143 {strides = array<i32>} : memref<8x8x32xf32, #tpu.memory_space<vmem>>, vector<1x8x32xf32>,
    %c5_i32 = arith.constant 5 : i32
    %144 = arith.index_cast %c5_i32 : i32 to index
    %c0_57 = arith.constant 0 : index
    %c0_58 = arith.constant 0 : index
    %145 = vector.load %arg8[%144, %c0_57, %c0_58] : memref<8x8x128xf32, #tpu.memory_space<vmem>>, vector<1x8x128xf32>
    %146 = vector.shape_cast %145 : vector<1x8x128xf32> to vector<8x128xf32>
    %cst_59 = arith.constant dense<0.000000e+00> : vector<8x128xf32>
    %147 = tpu.matmul %139, %1, %cst_59 {dimension_numbers = #tpu.dot_dimension_numbers<[1], [0], [0], [1], [0, 0, 1, 1], [], []>} : vector<8x32xf32>, vector<32x128xf32>, vector<8x128xf32> -> vector<8x128xf32>
    %148 = arith.addf %146, %147 : vector<8x128xf32>
    %cst_60 = arith.constant 0.000000e+00 : f32
    %149 = vector.broadcast %cst_60 : f32 to vector<8x128xf32>
    %150 = arith.subf %149, %148 : vector<8x128xf32>
    %151 = math.exp %150 : vector<8x128xf32>
    %cst_61 = arith.constant 1.000000e+00 : f32
    %152 = vector.broadcast %cst_61 : f32 to vector<8x128xf32>
    %153 = arith.addf %152, %151 : vector<8x128xf32>
    %cst_62 = arith.constant 1.000000e+00 : f32
    %154 = vector.broadcast %cst_62 : f32 to vector<8x128xf32>
    %155 = arith.divf %154, %153 : vector<8x128xf32>
    %156 = math.tanh %148 : vector<8x128xf32>
    %157 = vector.extract_strided_slice %155 {offsets = [0, 0], sizes = [8, 32], strides = [1, 1]} : vector<8x128xf32> to vector<8x32xf32>
    %158 = vector.extract_strided_slice %155 {offsets = [0, 32], sizes = [8, 32], strides = [1, 1]} : vector<8x128xf32> to vector<8x32xf32>
    %159 = vector.extract_strided_slice %156 {offsets = [0, 64], sizes = [8, 32], strides = [1, 1]} : vector<8x128xf32> to vector<8x32xf32>
    %160 = vector.extract_strided_slice %155 {offsets = [0, 96], sizes = [8, 32], strides = [1, 1]} : vector<8x128xf32> to vector<8x32xf32>
    %161 = arith.mulf %158, %137 : vector<8x32xf32>
    %162 = arith.mulf %157, %159 : vector<8x32xf32>
    %163 = arith.addf %161, %162 : vector<8x32xf32>
    %164 = math.tanh %163 : vector<8x32xf32>
    %165 = arith.mulf %160, %164 : vector<8x32xf32>
    %166 = arith.index_cast %c5_i32 : i32 to index
    %c0_63 = arith.constant 0 : index
    %c0_64 = arith.constant 0 : index
    %167 = vector.load %arg9[%166, %c0_63, %c0_64] : memref<8x8x32xf32, #tpu.memory_space<vmem>>, vector<1x8x32xf32>
    %168 = vector.shape_cast %167 : vector<1x8x32xf32> to vector<8x32xf32>
    %169 = vector.shape_cast %165 : vector<8x32xf32> to vector<1x8x32xf32>
    tpu.vector_store %arg9[%166, %c0_63, %c0_64], %169 {strides = array<i32>} : memref<8x8x32xf32, #tpu.memory_space<vmem>>, vector<1x8x32xf32>,
    %c6_i32 = arith.constant 6 : i32
    %170 = arith.index_cast %c6_i32 : i32 to index
    %c0_65 = arith.constant 0 : index
    %c0_66 = arith.constant 0 : index
    %171 = vector.load %arg8[%170, %c0_65, %c0_66] : memref<8x8x128xf32, #tpu.memory_space<vmem>>, vector<1x8x128xf32>
    %172 = vector.shape_cast %171 : vector<1x8x128xf32> to vector<8x128xf32>
    %cst_67 = arith.constant dense<0.000000e+00> : vector<8x128xf32>
    %173 = tpu.matmul %165, %1, %cst_67 {dimension_numbers = #tpu.dot_dimension_numbers<[1], [0], [0], [1], [0, 0, 1, 1], [], []>} : vector<8x32xf32>, vector<32x128xf32>, vector<8x128xf32> -> vector<8x128xf32>
    %174 = arith.addf %172, %173 : vector<8x128xf32>
    %cst_68 = arith.constant 0.000000e+00 : f32
    %175 = vector.broadcast %cst_68 : f32 to vector<8x128xf32>
    %176 = arith.subf %175, %174 : vector<8x128xf32>
    %177 = math.exp %176 : vector<8x128xf32>
    %cst_69 = arith.constant 1.000000e+00 : f32
    %178 = vector.broadcast %cst_69 : f32 to vector<8x128xf32>
    %179 = arith.addf %178, %177 : vector<8x128xf32>
    %cst_70 = arith.constant 1.000000e+00 : f32
    %180 = vector.broadcast %cst_70 : f32 to vector<8x128xf32>
    %181 = arith.divf %180, %179 : vector<8x128xf32>
    %182 = math.tanh %174 : vector<8x128xf32>
    %183 = vector.extract_strided_slice %181 {offsets = [0, 0], sizes = [8, 32], strides = [1, 1]} : vector<8x128xf32> to vector<8x32xf32>
    %184 = vector.extract_strided_slice %181 {offsets = [0, 32], sizes = [8, 32], strides = [1, 1]} : vector<8x128xf32> to vector<8x32xf32>
    %185 = vector.extract_strided_slice %182 {offsets = [0, 64], sizes = [8, 32], strides = [1, 1]} : vector<8x128xf32> to vector<8x32xf32>
    %186 = vector.extract_strided_slice %181 {offsets = [0, 96], sizes = [8, 32], strides = [1, 1]} : vector<8x128xf32> to vector<8x32xf32>
    %187 = arith.mulf %184, %163 : vector<8x32xf32>
    %188 = arith.mulf %183, %185 : vector<8x32xf32>
    %189 = arith.addf %187, %188 : vector<8x32xf32>
    %190 = math.tanh %189 : vector<8x32xf32>
    %191 = arith.mulf %186, %190 : vector<8x32xf32>
    %192 = arith.index_cast %c6_i32 : i32 to index
    %c0_71 = arith.constant 0 : index
    %c0_72 = arith.constant 0 : index
    %193 = vector.load %arg9[%192, %c0_71, %c0_72] : memref<8x8x32xf32, #tpu.memory_space<vmem>>, vector<1x8x32xf32>
    %194 = vector.shape_cast %193 : vector<1x8x32xf32> to vector<8x32xf32>
    %195 = vector.shape_cast %191 : vector<8x32xf32> to vector<1x8x32xf32>
    tpu.vector_store %arg9[%192, %c0_71, %c0_72], %195 {strides = array<i32>} : memref<8x8x32xf32, #tpu.memory_space<vmem>>, vector<1x8x32xf32>,
    %c7_i32 = arith.constant 7 : i32
    %196 = arith.index_cast %c7_i32 : i32 to index
    %c0_73 = arith.constant 0 : index
    %c0_74 = arith.constant 0 : index
    %197 = vector.load %arg8[%196, %c0_73, %c0_74] : memref<8x8x128xf32, #tpu.memory_space<vmem>>, vector<1x8x128xf32>
    %198 = vector.shape_cast %197 : vector<1x8x128xf32> to vector<8x128xf32>
    %cst_75 = arith.constant dense<0.000000e+00> : vector<8x128xf32>
    %199 = tpu.matmul %191, %1, %cst_75 {dimension_numbers = #tpu.dot_dimension_numbers<[1], [0], [0], [1], [0, 0, 1, 1], [], []>} : vector<8x32xf32>, vector<32x128xf32>, vector<8x128xf32> -> vector<8x128xf32>
    %200 = arith.addf %198, %199 : vector<8x128xf32>
    %cst_76 = arith.constant 0.000000e+00 : f32
    %201 = vector.broadcast %cst_76 : f32 to vector<8x128xf32>
    %202 = arith.subf %201, %200 : vector<8x128xf32>
    %203 = math.exp %202 : vector<8x128xf32>
    %cst_77 = arith.constant 1.000000e+00 : f32
    %204 = vector.broadcast %cst_77 : f32 to vector<8x128xf32>
    %205 = arith.addf %204, %203 : vector<8x128xf32>
    %cst_78 = arith.constant 1.000000e+00 : f32
    %206 = vector.broadcast %cst_78 : f32 to vector<8x128xf32>
    %207 = arith.divf %206, %205 : vector<8x128xf32>
    %208 = math.tanh %200 : vector<8x128xf32>
    %209 = vector.extract_strided_slice %207 {offsets = [0, 0], sizes = [8, 32], strides = [1, 1]} : vector<8x128xf32> to vector<8x32xf32>
    %210 = vector.extract_strided_slice %207 {offsets = [0, 32], sizes = [8, 32], strides = [1, 1]} : vector<8x128xf32> to vector<8x32xf32>
    %211 = vector.extract_strided_slice %208 {offsets = [0, 64], sizes = [8, 32], strides = [1, 1]} : vector<8x128xf32> to vector<8x32xf32>
    %212 = vector.extract_strided_slice %207 {offsets = [0, 96], sizes = [8, 32], strides = [1, 1]} : vector<8x128xf32> to vector<8x32xf32>
    %213 = arith.mulf %210, %189 : vector<8x32xf32>
    %214 = arith.mulf %209, %211 : vector<8x32xf32>
    %215 = arith.addf %213, %214 : vector<8x32xf32>
    %216 = math.tanh %215 : vector<8x32xf32>
    %217 = arith.mulf %212, %216 : vector<8x32xf32>
    %218 = arith.index_cast %c7_i32 : i32 to index
    %c0_79 = arith.constant 0 : index
    %c0_80 = arith.constant 0 : index
    %219 = vector.load %arg9[%218, %c0_79, %c0_80] : memref<8x8x32xf32, #tpu.memory_space<vmem>>, vector<1x8x32xf32>
    %220 = vector.shape_cast %219 : vector<1x8x32xf32> to vector<8x32xf32>
    %221 = vector.shape_cast %217 : vector<8x32xf32> to vector<1x8x32xf32>
    tpu.vector_store %arg9[%218, %c0_79, %c0_80], %221 {strides = array<i32>} : memref<8x8x32xf32, #tpu.memory_space<vmem>>, vector<1x8x32xf32>,
    %c8_i32 = arith.constant 8 : i32
    %c0_81 = arith.constant 0 : index
    %c0_82 = arith.constant 0 : index
    %c0_83 = arith.constant 0 : index
    %222 = vector.load %arg9[%c0_81, %c0_82, %c0_83] : memref<8x8x32xf32, #tpu.memory_space<vmem>>, vector<8x8x32xf32>
    %cst_84 = arith.constant dense<0.000000e+00> : vector<8x8xf32>
    %223 = vector.multi_reduction <add>, %222, %cst_84 [2] : vector<8x8x32xf32> to vector<8x8xf32>
    %224 = vector.shape_cast %223 : vector<8x8xf32> to vector<8x8x1xf32>
    %cst_85 = arith.constant 3.200000e+01 : f32
    %225 = vector.broadcast %cst_85 : f32 to vector<8x8x1xf32>
    %226 = arith.divf %224, %225 : vector<8x8x1xf32>
    %227 = vector.broadcast %226 : vector<8x8x1xf32> to vector<8x8x32xf32>
    %228 = arith.subf %222, %227 : vector<8x8x32xf32>
    %229 = arith.mulf %228, %228 : vector<8x8x32xf32>
    %cst_86 = arith.constant dense<0.000000e+00> : vector<8x8xf32>
    %230 = vector.multi_reduction <add>, %229, %cst_86 [2] : vector<8x8x32xf32> to vector<8x8xf32>
    %231 = vector.shape_cast %230 : vector<8x8xf32> to vector<8x8x1xf32>
    %cst_87 = arith.constant 3.200000e+01 : f32
    %232 = vector.broadcast %cst_87 : f32 to vector<8x8x1xf32>
    %233 = arith.divf %231, %232 : vector<8x8x1xf32>
    %cst_88 = arith.constant 9.99999974E-6 : f32
    %234 = vector.broadcast %cst_88 : f32 to vector<8x8x1xf32>
    %235 = arith.addf %233, %234 : vector<8x8x1xf32>
    %236 = math.rsqrt %235 : vector<8x8x1xf32>
    %237 = vector.broadcast %236 : vector<8x8x1xf32> to vector<8x8x32xf32>
    %238 = arith.mulf %228, %237 : vector<8x8x32xf32>
    %239 = vector.shape_cast %3 : vector<1x32xf32> to vector<1x1x32xf32>
    %240 = vector.broadcast %239 : vector<1x1x32xf32> to vector<8x8x32xf32>
    %241 = arith.mulf %238, %240 : vector<8x8x32xf32>
    %242 = vector.shape_cast %4 : vector<1x32xf32> to vector<1x1x32xf32>
    %243 = vector.broadcast %242 : vector<1x1x32xf32> to vector<8x8x32xf32>
    %244 = arith.addf %241, %243 : vector<8x8x32xf32>
    %c0_89 = arith.constant 0 : index
    %c0_90 = arith.constant 0 : index
    %c0_91 = arith.constant 0 : index
    %245 = vector.load %arg7[%c0_89, %c0_90, %c0_91] : memref<8x8x32xf32, #tpu.memory_space<vmem>>, vector<8x8x32xf32>
    tpu.vector_store %arg7[%c0_89, %c0_90, %c0_91], %244 {strides = array<i32>} : memref<8x8x32xf32, #tpu.memory_space<vmem>>, vector<8x8x32xf32>,
    return
  }
  func.func @transform_0(%arg0: i32) -> (i32, i32, i32) {
    %c0_i32 = arith.constant 0 : i32
    %c0_i32_0 = arith.constant 0 : i32
    %c0_i32_1 = arith.constant 0 : i32
    return %c0_i32, %arg0, %c0_i32_0 : i32, i32, i32
  }
  func.func @transform_1(%arg0: i32) -> (i32, i32) {
    %c0_i32 = arith.constant 0 : i32
    %c0_i32_0 = arith.constant 0 : i32
    %c0_i32_1 = arith.constant 0 : i32
    return %c0_i32, %c0_i32_0 : i32, i32
  }
  func.func @transform_2(%arg0: i32) -> (i32, i32) {
    %c0_i32 = arith.constant 0 : i32
    %c0_i32_0 = arith.constant 0 : i32
    %c0_i32_1 = arith.constant 0 : i32
    return %c0_i32, %c0_i32_0 : i32, i32
  }
  func.func @transform_3(%arg0: i32) -> (i32, i32) {
    %c0_i32 = arith.constant 0 : i32
    %c0_i32_0 = arith.constant 0 : i32
    %c0_i32_1 = arith.constant 0 : i32
    return %c0_i32, %c0_i32_0 : i32, i32
  }
  func.func @transform_4(%arg0: i32) -> (i32, i32) {
    %c0_i32 = arith.constant 0 : i32
    %c0_i32_0 = arith.constant 0 : i32
    %c0_i32_1 = arith.constant 0 : i32
    return %c0_i32, %c0_i32_0 : i32, i32
  }
  func.func @transform_5(%arg0: i32) -> (i32, i32) {
    %c0_i32 = arith.constant 0 : i32
    %c0_i32_0 = arith.constant 0 : i32
    %c0_i32_1 = arith.constant 0 : i32
    return %c0_i32, %c0_i32_0 : i32, i32
  }
  func.func @transform_6(%arg0: i32) -> (i32, i32, i32) {
    %c0_i32 = arith.constant 0 : i32
    %c0_i32_0 = arith.constant 0 : i32
    %c0_i32_1 = arith.constant 0 : i32
    return %c0_i32, %arg0, %c0_i32_0 : i32, i32, i32
  }
}

module attributes {stable_mosaic.version = 11 : i64} {
  func.func @_lstm_ln_layer_kernel(%arg0: i32, %arg1: memref<8x8x16xf32, #tpu.memory_space<vmem>>, %arg2: memref<16x128xf32, #tpu.memory_space<vmem>>, %arg3: memref<32x128xf32, #tpu.memory_space<vmem>>, %arg4: memref<1x128xf32, #tpu.memory_space<vmem>>, %arg5: memref<1x32xf32, #tpu.memory_space<vmem>>, %arg6: memref<1x32xf32, #tpu.memory_space<vmem>>, %arg7: memref<8x8x32xf32, #tpu.memory_space<vmem>>, %arg8: memref<8x8x128xf32, #tpu.memory_space<vmem>>, %arg9: memref<8x8x32xf32, #tpu.memory_space<vmem>>) attributes {dimension_semantics = [#tpu.dimension_semantics<parallel>], iteration_bounds = array<i64: 1>, scalar_prefetch = 0 : i64, scratch_operands = 2 : i64, tpu.core_type = #tpu.core_type<tc>, window_params = [{transform_indices = @transform_0, window_bounds = array<i64: 8, 8, 16>}, {pipeline_mode = #tpu.pipeline_mode<synchronous>, transform_indices = @transform_1, window_bounds = array<i64: 16, 128>}, {pipeline_mode = #tpu.pipeline_mode<synchronous>, transform_indices = @transform_2, window_bounds = array<i64: 32, 128>}, {pipeline_mode = #tpu.pipeline_mode<synchronous>, transform_indices = @transform_3, window_bounds = array<i64: 1, 128>}, {pipeline_mode = #tpu.pipeline_mode<synchronous>, transform_indices = @transform_4, window_bounds = array<i64: 1, 32>}, {pipeline_mode = #tpu.pipeline_mode<synchronous>, transform_indices = @transform_5, window_bounds = array<i64: 1, 32>}, {transform_indices = @transform_6, window_bounds = array<i64: 8, 8, 32>}]} {
    %c0 = arith.constant 0 : index
    %c0_0 = arith.constant 0 : index
    %0 = vector.load %arg2[%c0, %c0_0] : memref<16x128xf32, #tpu.memory_space<vmem>>, vector<16x128xf32>
    %c0_1 = arith.constant 0 : index
    %c0_2 = arith.constant 0 : index
    %1 = vector.load %arg3[%c0_1, %c0_2] : memref<32x128xf32, #tpu.memory_space<vmem>>, vector<32x128xf32>
    %c0_3 = arith.constant 0 : index
    %c0_4 = arith.constant 0 : index
    %2 = vector.load %arg4[%c0_3, %c0_4] : memref<1x128xf32, #tpu.memory_space<vmem>>, vector<1x128xf32>
    %c0_5 = arith.constant 0 : index
    %c0_6 = arith.constant 0 : index
    %3 = vector.load %arg5[%c0_5, %c0_6] : memref<1x32xf32, #tpu.memory_space<vmem>>, vector<1x32xf32>
    %c0_7 = arith.constant 0 : index
    %c0_8 = arith.constant 0 : index
    %4 = vector.load %arg6[%c0_7, %c0_8] : memref<1x32xf32, #tpu.memory_space<vmem>>, vector<1x32xf32>
    %c0_9 = arith.constant 0 : index
    %c0_10 = arith.constant 0 : index
    %c0_11 = arith.constant 0 : index
    %5 = vector.load %arg1[%c0_9, %c0_10, %c0_11] : memref<8x8x16xf32, #tpu.memory_space<vmem>>, vector<8x8x16xf32>
    %6 = vector.shape_cast %5 : vector<8x8x16xf32> to vector<64x16xf32>
    %cst = arith.constant dense<0.000000e+00> : vector<64x128xf32>
    %7 = tpu.matmul %6, %0, %cst {dimension_numbers = #tpu.dot_dimension_numbers<[1], [0], [0], [1], [0, 0, 1, 1], [], []>} : vector<64x16xf32>, vector<16x128xf32>, vector<64x128xf32> -> vector<64x128xf32>
    %8 = vector.broadcast %2 : vector<1x128xf32> to vector<64x128xf32>
    %9 = arith.addf %7, %8 : vector<64x128xf32>
    %10 = vector.shape_cast %9 : vector<64x128xf32> to vector<8x8x128xf32>
    %c0_12 = arith.constant 0 : index
    %c0_13 = arith.constant 0 : index
    %c0_14 = arith.constant 0 : index
    %11 = vector.load %arg8[%c0_12, %c0_13, %c0_14] : memref<8x8x128xf32, #tpu.memory_space<vmem>>, vector<8x8x128xf32>
    tpu.vector_store %arg8[%c0_12, %c0_13, %c0_14], %10 {strides = array<i32>} : memref<8x8x128xf32, #tpu.memory_space<vmem>>, vector<8x8x128xf32>,
    %cst_15 = arith.constant 0.000000e+00 : f32
    %12 = vector.broadcast %cst_15 : f32 to vector<8x32xf32>
    %cst_16 = arith.constant 0.000000e+00 : f32
    %13 = vector.broadcast %cst_16 : f32 to vector<8x32xf32>
    %c0_i32 = arith.constant 0 : i32
    %14 = arith.index_cast %c0_i32 : i32 to index
    %c0_17 = arith.constant 0 : index
    %c0_18 = arith.constant 0 : index
    %15 = vector.load %arg8[%14, %c0_17, %c0_18] : memref<8x8x128xf32, #tpu.memory_space<vmem>>, vector<1x8x128xf32>
    %16 = vector.shape_cast %15 : vector<1x8x128xf32> to vector<8x128xf32>
    %cst_19 = arith.constant dense<0.000000e+00> : vector<8x128xf32>
    %17 = tpu.matmul %12, %1, %cst_19 {dimension_numbers = #tpu.dot_dimension_numbers<[1], [0], [0], [1], [0, 0, 1, 1], [], []>} : vector<8x32xf32>, vector<32x128xf32>, vector<8x128xf32> -> vector<8x128xf32>
    %18 = arith.addf %16, %17 : vector<8x128xf32>
    %cst_20 = arith.constant 0.000000e+00 : f32
    %19 = vector.broadcast %cst_20 : f32 to vector<8x128xf32>
    %20 = arith.subf %19, %18 : vector<8x128xf32>
    %21 = math.exp %20 : vector<8x128xf32>
    %cst_21 = arith.constant 1.000000e+00 : f32
    %22 = vector.broadcast %cst_21 : f32 to vector<8x128xf32>
    %23 = arith.addf %22, %21 : vector<8x128xf32>
    %cst_22 = arith.constant 1.000000e+00 : f32
    %24 = vector.broadcast %cst_22 : f32 to vector<8x128xf32>
    %25 = arith.divf %24, %23 : vector<8x128xf32>
    %26 = math.tanh %18 : vector<8x128xf32>
    %27 = vector.extract_strided_slice %25 {offsets = [0, 0], sizes = [8, 32], strides = [1, 1]} : vector<8x128xf32> to vector<8x32xf32>
    %28 = vector.extract_strided_slice %25 {offsets = [0, 32], sizes = [8, 32], strides = [1, 1]} : vector<8x128xf32> to vector<8x32xf32>
    %29 = vector.extract_strided_slice %26 {offsets = [0, 64], sizes = [8, 32], strides = [1, 1]} : vector<8x128xf32> to vector<8x32xf32>
    %30 = vector.extract_strided_slice %25 {offsets = [0, 96], sizes = [8, 32], strides = [1, 1]} : vector<8x128xf32> to vector<8x32xf32>
    %31 = arith.mulf %28, %13 : vector<8x32xf32>
    %32 = arith.mulf %27, %29 : vector<8x32xf32>
    %33 = arith.addf %31, %32 : vector<8x32xf32>
    %34 = math.tanh %33 : vector<8x32xf32>
    %35 = arith.mulf %30, %34 : vector<8x32xf32>
    %36 = arith.index_cast %c0_i32 : i32 to index
    %c0_23 = arith.constant 0 : index
    %c0_24 = arith.constant 0 : index
    %37 = vector.load %arg9[%36, %c0_23, %c0_24] : memref<8x8x32xf32, #tpu.memory_space<vmem>>, vector<1x8x32xf32>
    %38 = vector.shape_cast %37 : vector<1x8x32xf32> to vector<8x32xf32>
    %39 = vector.shape_cast %35 : vector<8x32xf32> to vector<1x8x32xf32>
    tpu.vector_store %arg9[%36, %c0_23, %c0_24], %39 {strides = array<i32>} : memref<8x8x32xf32, #tpu.memory_space<vmem>>, vector<1x8x32xf32>,
    %c1_i32 = arith.constant 1 : i32
    %40 = arith.index_cast %c1_i32 : i32 to index
    %c0_25 = arith.constant 0 : index
    %c0_26 = arith.constant 0 : index
    %41 = vector.load %arg8[%40, %c0_25, %c0_26] : memref<8x8x128xf32, #tpu.memory_space<vmem>>, vector<1x8x128xf32>
    %42 = vector.shape_cast %41 : vector<1x8x128xf32> to vector<8x128xf32>
    %cst_27 = arith.constant dense<0.000000e+00> : vector<8x128xf32>
    %43 = tpu.matmul %35, %1, %cst_27 {dimension_numbers = #tpu.dot_dimension_numbers<[1], [0], [0], [1], [0, 0, 1, 1], [], []>} : vector<8x32xf32>, vector<32x128xf32>, vector<8x128xf32> -> vector<8x128xf32>
    %44 = arith.addf %42, %43 : vector<8x128xf32>
    %cst_28 = arith.constant 0.000000e+00 : f32
    %45 = vector.broadcast %cst_28 : f32 to vector<8x128xf32>
    %46 = arith.subf %45, %44 : vector<8x128xf32>
    %47 = math.exp %46 : vector<8x128xf32>
    %cst_29 = arith.constant 1.000000e+00 : f32
    %48 = vector.broadcast %cst_29 : f32 to vector<8x128xf32>
    %49 = arith.addf %48, %47 : vector<8x128xf32>
    %cst_30 = arith.constant 1.000000e+00 : f32
    %50 = vector.broadcast %cst_30 : f32 to vector<8x128xf32>
    %51 = arith.divf %50, %49 : vector<8x128xf32>
    %52 = math.tanh %44 : vector<8x128xf32>
    %53 = vector.extract_strided_slice %51 {offsets = [0, 0], sizes = [8, 32], strides = [1, 1]} : vector<8x128xf32> to vector<8x32xf32>
    %54 = vector.extract_strided_slice %51 {offsets = [0, 32], sizes = [8, 32], strides = [1, 1]} : vector<8x128xf32> to vector<8x32xf32>
    %55 = vector.extract_strided_slice %52 {offsets = [0, 64], sizes = [8, 32], strides = [1, 1]} : vector<8x128xf32> to vector<8x32xf32>
    %56 = vector.extract_strided_slice %51 {offsets = [0, 96], sizes = [8, 32], strides = [1, 1]} : vector<8x128xf32> to vector<8x32xf32>
    %57 = arith.mulf %54, %33 : vector<8x32xf32>
    %58 = arith.mulf %53, %55 : vector<8x32xf32>
    %59 = arith.addf %57, %58 : vector<8x32xf32>
    %60 = math.tanh %59 : vector<8x32xf32>
    %61 = arith.mulf %56, %60 : vector<8x32xf32>
    %62 = arith.index_cast %c1_i32 : i32 to index
    %c0_31 = arith.constant 0 : index
    %c0_32 = arith.constant 0 : index
    %63 = vector.load %arg9[%62, %c0_31, %c0_32] : memref<8x8x32xf32, #tpu.memory_space<vmem>>, vector<1x8x32xf32>
    %64 = vector.shape_cast %63 : vector<1x8x32xf32> to vector<8x32xf32>
    %65 = vector.shape_cast %61 : vector<8x32xf32> to vector<1x8x32xf32>
    tpu.vector_store %arg9[%62, %c0_31, %c0_32], %65 {strides = array<i32>} : memref<8x8x32xf32, #tpu.memory_space<vmem>>, vector<1x8x32xf32>,
    %c2_i32 = arith.constant 2 : i32
    %66 = arith.index_cast %c2_i32 : i32 to index
    %c0_33 = arith.constant 0 : index
    %c0_34 = arith.constant 0 : index
    %67 = vector.load %arg8[%66, %c0_33, %c0_34] : memref<8x8x128xf32, #tpu.memory_space<vmem>>, vector<1x8x128xf32>
    %68 = vector.shape_cast %67 : vector<1x8x128xf32> to vector<8x128xf32>
    %cst_35 = arith.constant dense<0.000000e+00> : vector<8x128xf32>
    %69 = tpu.matmul %61, %1, %cst_35 {dimension_numbers = #tpu.dot_dimension_numbers<[1], [0], [0], [1], [0, 0, 1, 1], [], []>} : vector<8x32xf32>, vector<32x128xf32>, vector<8x128xf32> -> vector<8x128xf32>
    %70 = arith.addf %68, %69 : vector<8x128xf32>
    %cst_36 = arith.constant 0.000000e+00 : f32
    %71 = vector.broadcast %cst_36 : f32 to vector<8x128xf32>
    %72 = arith.subf %71, %70 : vector<8x128xf32>
    %73 = math.exp %72 : vector<8x128xf32>
    %cst_37 = arith.constant 1.000000e+00 : f32
    %74 = vector.broadcast %cst_37 : f32 to vector<8x128xf32>
    %75 = arith.addf %74, %73 : vector<8x128xf32>
    %cst_38 = arith.constant 1.000000e+00 : f32
    %76 = vector.broadcast %cst_38 : f32 to vector<8x128xf32>
    %77 = arith.divf %76, %75 : vector<8x128xf32>
    %78 = math.tanh %70 : vector<8x128xf32>
    %79 = vector.extract_strided_slice %77 {offsets = [0, 0], sizes = [8, 32], strides = [1, 1]} : vector<8x128xf32> to vector<8x32xf32>
    %80 = vector.extract_strided_slice %77 {offsets = [0, 32], sizes = [8, 32], strides = [1, 1]} : vector<8x128xf32> to vector<8x32xf32>
    %81 = vector.extract_strided_slice %78 {offsets = [0, 64], sizes = [8, 32], strides = [1, 1]} : vector<8x128xf32> to vector<8x32xf32>
    %82 = vector.extract_strided_slice %77 {offsets = [0, 96], sizes = [8, 32], strides = [1, 1]} : vector<8x128xf32> to vector<8x32xf32>
    %83 = arith.mulf %80, %59 : vector<8x32xf32>
    %84 = arith.mulf %79, %81 : vector<8x32xf32>
    %85 = arith.addf %83, %84 : vector<8x32xf32>
    %86 = math.tanh %85 : vector<8x32xf32>
    %87 = arith.mulf %82, %86 : vector<8x32xf32>
    %88 = arith.index_cast %c2_i32 : i32 to index
    %c0_39 = arith.constant 0 : index
    %c0_40 = arith.constant 0 : index
    %89 = vector.load %arg9[%88, %c0_39, %c0_40] : memref<8x8x32xf32, #tpu.memory_space<vmem>>, vector<1x8x32xf32>
    %90 = vector.shape_cast %89 : vector<1x8x32xf32> to vector<8x32xf32>
    %91 = vector.shape_cast %87 : vector<8x32xf32> to vector<1x8x32xf32>
    tpu.vector_store %arg9[%88, %c0_39, %c0_40], %91 {strides = array<i32>} : memref<8x8x32xf32, #tpu.memory_space<vmem>>, vector<1x8x32xf32>,
    %c3_i32 = arith.constant 3 : i32
    %92 = arith.index_cast %c3_i32 : i32 to index
    %c0_41 = arith.constant 0 : index
    %c0_42 = arith.constant 0 : index
    %93 = vector.load %arg8[%92, %c0_41, %c0_42] : memref<8x8x128xf32, #tpu.memory_space<vmem>>, vector<1x8x128xf32>
    %94 = vector.shape_cast %93 : vector<1x8x128xf32> to vector<8x128xf32>
    %cst_43 = arith.constant dense<0.000000e+00> : vector<8x128xf32>
    %95 = tpu.matmul %87, %1, %cst_43 {dimension_numbers = #tpu.dot_dimension_numbers<[1], [0], [0], [1], [0, 0, 1, 1], [], []>} : vector<8x32xf32>, vector<32x128xf32>, vector<8x128xf32> -> vector<8x128xf32>
    %96 = arith.addf %94, %95 : vector<8x128xf32>
    %cst_44 = arith.constant 0.000000e+00 : f32
    %97 = vector.broadcast %cst_44 : f32 to vector<8x128xf32>
    %98 = arith.subf %97, %96 : vector<8x128xf32>
    %99 = math.exp %98 : vector<8x128xf32>
    %cst_45 = arith.constant 1.000000e+00 : f32
    %100 = vector.broadcast %cst_45 : f32 to vector<8x128xf32>
    %101 = arith.addf %100, %99 : vector<8x128xf32>
    %cst_46 = arith.constant 1.000000e+00 : f32
    %102 = vector.broadcast %cst_46 : f32 to vector<8x128xf32>
    %103 = arith.divf %102, %101 : vector<8x128xf32>
    %104 = math.tanh %96 : vector<8x128xf32>
    %105 = vector.extract_strided_slice %103 {offsets = [0, 0], sizes = [8, 32], strides = [1, 1]} : vector<8x128xf32> to vector<8x32xf32>
    %106 = vector.extract_strided_slice %103 {offsets = [0, 32], sizes = [8, 32], strides = [1, 1]} : vector<8x128xf32> to vector<8x32xf32>
    %107 = vector.extract_strided_slice %104 {offsets = [0, 64], sizes = [8, 32], strides = [1, 1]} : vector<8x128xf32> to vector<8x32xf32>
    %108 = vector.extract_strided_slice %103 {offsets = [0, 96], sizes = [8, 32], strides = [1, 1]} : vector<8x128xf32> to vector<8x32xf32>
    %109 = arith.mulf %106, %85 : vector<8x32xf32>
    %110 = arith.mulf %105, %107 : vector<8x32xf32>
    %111 = arith.addf %109, %110 : vector<8x32xf32>
    %112 = math.tanh %111 : vector<8x32xf32>
    %113 = arith.mulf %108, %112 : vector<8x32xf32>
    %114 = arith.index_cast %c3_i32 : i32 to index
    %c0_47 = arith.constant 0 : index
    %c0_48 = arith.constant 0 : index
    %115 = vector.load %arg9[%114, %c0_47, %c0_48] : memref<8x8x32xf32, #tpu.memory_space<vmem>>, vector<1x8x32xf32>
    %116 = vector.shape_cast %115 : vector<1x8x32xf32> to vector<8x32xf32>
    %117 = vector.shape_cast %113 : vector<8x32xf32> to vector<1x8x32xf32>
    tpu.vector_store %arg9[%114, %c0_47, %c0_48], %117 {strides = array<i32>} : memref<8x8x32xf32, #tpu.memory_space<vmem>>, vector<1x8x32xf32>,
    %c4_i32 = arith.constant 4 : i32
    %118 = arith.index_cast %c4_i32 : i32 to index
    %c0_49 = arith.constant 0 : index
    %c0_50 = arith.constant 0 : index
    %119 = vector.load %arg8[%118, %c0_49, %c0_50] : memref<8x8x128xf32, #tpu.memory_space<vmem>>, vector<1x8x128xf32>
    %120 = vector.shape_cast %119 : vector<1x8x128xf32> to vector<8x128xf32>
    %cst_51 = arith.constant dense<0.000000e+00> : vector<8x128xf32>
    %121 = tpu.matmul %113, %1, %cst_51 {dimension_numbers = #tpu.dot_dimension_numbers<[1], [0], [0], [1], [0, 0, 1, 1], [], []>} : vector<8x32xf32>, vector<32x128xf32>, vector<8x128xf32> -> vector<8x128xf32>
    %122 = arith.addf %120, %121 : vector<8x128xf32>
    %cst_52 = arith.constant 0.000000e+00 : f32
    %123 = vector.broadcast %cst_52 : f32 to vector<8x128xf32>
    %124 = arith.subf %123, %122 : vector<8x128xf32>
    %125 = math.exp %124 : vector<8x128xf32>
    %cst_53 = arith.constant 1.000000e+00 : f32
    %126 = vector.broadcast %cst_53 : f32 to vector<8x128xf32>
    %127 = arith.addf %126, %125 : vector<8x128xf32>
    %cst_54 = arith.constant 1.000000e+00 : f32
    %128 = vector.broadcast %cst_54 : f32 to vector<8x128xf32>
    %129 = arith.divf %128, %127 : vector<8x128xf32>
    %130 = math.tanh %122 : vector<8x128xf32>
    %131 = vector.extract_strided_slice %129 {offsets = [0, 0], sizes = [8, 32], strides = [1, 1]} : vector<8x128xf32> to vector<8x32xf32>
    %132 = vector.extract_strided_slice %129 {offsets = [0, 32], sizes = [8, 32], strides = [1, 1]} : vector<8x128xf32> to vector<8x32xf32>
    %133 = vector.extract_strided_slice %130 {offsets = [0, 64], sizes = [8, 32], strides = [1, 1]} : vector<8x128xf32> to vector<8x32xf32>
    %134 = vector.extract_strided_slice %129 {offsets = [0, 96], sizes = [8, 32], strides = [1, 1]} : vector<8x128xf32> to vector<8x32xf32>
    %135 = arith.mulf %132, %111 : vector<8x32xf32>
    %136 = arith.mulf %131, %133 : vector<8x32xf32>
    %137 = arith.addf %135, %136 : vector<8x32xf32>
    %138 = math.tanh %137 : vector<8x32xf32>
    %139 = arith.mulf %134, %138 : vector<8x32xf32>
    %140 = arith.index_cast %c4_i32 : i32 to index
    %c0_55 = arith.constant 0 : index
    %c0_56 = arith.constant 0 : index
    %141 = vector.load %arg9[%140, %c0_55, %c0_56] : memref<8x8x32xf32, #tpu.memory_space<vmem>>, vector<1x8x32xf32>
    %142 = vector.shape_cast %141 : vector<1x8x32xf32> to vector<8x32xf32>
    %143 = vector.shape_cast %139 : vector<8x32xf32> to vector<1x8x32xf32>
    tpu.vector_store %arg9[%140, %c0_55, %c0_56], %143 {strides = array<i32>} : memref<8x8x32xf32, #tpu.memory_space<vmem>>, vector<1x8x32xf32>,
    %c5_i32 = arith.constant 5 : i32
    %144 = arith.index_cast %c5_i32 : i32 to index
    %c0_57 = arith.constant 0 : index
    %c0_58 = arith.constant 0 : index
    %145 = vector.load %arg8[%144, %c0_57, %c0_58] : memref<8x8x128xf32, #tpu.memory_space<vmem>>, vector<1x8x128xf32>
    %146 = vector.shape_cast %145 : vector<1x8x128xf32> to vector<8x128xf32>
    %cst_59 = arith.constant dense<0.000000e+00> : vector<8x128xf32>
    %147 = tpu.matmul %139, %1, %cst_59 {dimension_numbers = #tpu.dot_dimension_numbers<[1], [0], [0], [1], [0, 0, 1, 1], [], []>} : vector<8x32xf32>, vector<32x128xf32>, vector<8x128xf32> -> vector<8x128xf32>
    %148 = arith.addf %146, %147 : vector<8x128xf32>
    %cst_60 = arith.constant 0.000000e+00 : f32
    %149 = vector.broadcast %cst_60 : f32 to vector<8x128xf32>
    %150 = arith.subf %149, %148 : vector<8x128xf32>
    %151 = math.exp %150 : vector<8x128xf32>
    %cst_61 = arith.constant 1.000000e+00 : f32
    %152 = vector.broadcast %cst_61 : f32 to vector<8x128xf32>
    %153 = arith.addf %152, %151 : vector<8x128xf32>
    %cst_62 = arith.constant 1.000000e+00 : f32
    %154 = vector.broadcast %cst_62 : f32 to vector<8x128xf32>
    %155 = arith.divf %154, %153 : vector<8x128xf32>
    %156 = math.tanh %148 : vector<8x128xf32>
    %157 = vector.extract_strided_slice %155 {offsets = [0, 0], sizes = [8, 32], strides = [1, 1]} : vector<8x128xf32> to vector<8x32xf32>
    %158 = vector.extract_strided_slice %155 {offsets = [0, 32], sizes = [8, 32], strides = [1, 1]} : vector<8x128xf32> to vector<8x32xf32>
    %159 = vector.extract_strided_slice %156 {offsets = [0, 64], sizes = [8, 32], strides = [1, 1]} : vector<8x128xf32> to vector<8x32xf32>
    %160 = vector.extract_strided_slice %155 {offsets = [0, 96], sizes = [8, 32], strides = [1, 1]} : vector<8x128xf32> to vector<8x32xf32>
    %161 = arith.mulf %158, %137 : vector<8x32xf32>
    %162 = arith.mulf %157, %159 : vector<8x32xf32>
    %163 = arith.addf %161, %162 : vector<8x32xf32>
    %164 = math.tanh %163 : vector<8x32xf32>
    %165 = arith.mulf %160, %164 : vector<8x32xf32>
    %166 = arith.index_cast %c5_i32 : i32 to index
    %c0_63 = arith.constant 0 : index
    %c0_64 = arith.constant 0 : index
    %167 = vector.load %arg9[%166, %c0_63, %c0_64] : memref<8x8x32xf32, #tpu.memory_space<vmem>>, vector<1x8x32xf32>
    %168 = vector.shape_cast %167 : vector<1x8x32xf32> to vector<8x32xf32>
    %169 = vector.shape_cast %165 : vector<8x32xf32> to vector<1x8x32xf32>
    tpu.vector_store %arg9[%166, %c0_63, %c0_64], %169 {strides = array<i32>} : memref<8x8x32xf32, #tpu.memory_space<vmem>>, vector<1x8x32xf32>,
    %c6_i32 = arith.constant 6 : i32
    %170 = arith.index_cast %c6_i32 : i32 to index
    %c0_65 = arith.constant 0 : index
    %c0_66 = arith.constant 0 : index
    %171 = vector.load %arg8[%170, %c0_65, %c0_66] : memref<8x8x128xf32, #tpu.memory_space<vmem>>, vector<1x8x128xf32>
    %172 = vector.shape_cast %171 : vector<1x8x128xf32> to vector<8x128xf32>
    %cst_67 = arith.constant dense<0.000000e+00> : vector<8x128xf32>
    %173 = tpu.matmul %165, %1, %cst_67 {dimension_numbers = #tpu.dot_dimension_numbers<[1], [0], [0], [1], [0, 0, 1, 1], [], []>} : vector<8x32xf32>, vector<32x128xf32>, vector<8x128xf32> -> vector<8x128xf32>
    %174 = arith.addf %172, %173 : vector<8x128xf32>
    %cst_68 = arith.constant 0.000000e+00 : f32
    %175 = vector.broadcast %cst_68 : f32 to vector<8x128xf32>
    %176 = arith.subf %175, %174 : vector<8x128xf32>
    %177 = math.exp %176 : vector<8x128xf32>
    %cst_69 = arith.constant 1.000000e+00 : f32
    %178 = vector.broadcast %cst_69 : f32 to vector<8x128xf32>
    %179 = arith.addf %178, %177 : vector<8x128xf32>
    %cst_70 = arith.constant 1.000000e+00 : f32
    %180 = vector.broadcast %cst_70 : f32 to vector<8x128xf32>
    %181 = arith.divf %180, %179 : vector<8x128xf32>
    %182 = math.tanh %174 : vector<8x128xf32>
    %183 = vector.extract_strided_slice %181 {offsets = [0, 0], sizes = [8, 32], strides = [1, 1]} : vector<8x128xf32> to vector<8x32xf32>
    %184 = vector.extract_strided_slice %181 {offsets = [0, 32], sizes = [8, 32], strides = [1, 1]} : vector<8x128xf32> to vector<8x32xf32>
    %185 = vector.extract_strided_slice %182 {offsets = [0, 64], sizes = [8, 32], strides = [1, 1]} : vector<8x128xf32> to vector<8x32xf32>
    %186 = vector.extract_strided_slice %181 {offsets = [0, 96], sizes = [8, 32], strides = [1, 1]} : vector<8x128xf32> to vector<8x32xf32>
    %187 = arith.mulf %184, %163 : vector<8x32xf32>
    %188 = arith.mulf %183, %185 : vector<8x32xf32>
    %189 = arith.addf %187, %188 : vector<8x32xf32>
    %190 = math.tanh %189 : vector<8x32xf32>
    %191 = arith.mulf %186, %190 : vector<8x32xf32>
    %192 = arith.index_cast %c6_i32 : i32 to index
    %c0_71 = arith.constant 0 : index
    %c0_72 = arith.constant 0 : index
    %193 = vector.load %arg9[%192, %c0_71, %c0_72] : memref<8x8x32xf32, #tpu.memory_space<vmem>>, vector<1x8x32xf32>
    %194 = vector.shape_cast %193 : vector<1x8x32xf32> to vector<8x32xf32>
    %195 = vector.shape_cast %191 : vector<8x32xf32> to vector<1x8x32xf32>
    tpu.vector_store %arg9[%192, %c0_71, %c0_72], %195 {strides = array<i32>} : memref<8x8x32xf32, #tpu.memory_space<vmem>>, vector<1x8x32xf32>,
    %c7_i32 = arith.constant 7 : i32
    %196 = arith.index_cast %c7_i32 : i32 to index
    %c0_73 = arith.constant 0 : index
    %c0_74 = arith.constant 0 : index
    %197 = vector.load %arg8[%196, %c0_73, %c0_74] : memref<8x8x128xf32, #tpu.memory_space<vmem>>, vector<1x8x128xf32>
    %198 = vector.shape_cast %197 : vector<1x8x128xf32> to vector<8x128xf32>
    %cst_75 = arith.constant dense<0.000000e+00> : vector<8x128xf32>
    %199 = tpu.matmul %191, %1, %cst_75 {dimension_numbers = #tpu.dot_dimension_numbers<[1], [0], [0], [1], [0, 0, 1, 1], [], []>} : vector<8x32xf32>, vector<32x128xf32>, vector<8x128xf32> -> vector<8x128xf32>
    %200 = arith.addf %198, %199 : vector<8x128xf32>
    %cst_76 = arith.constant 0.000000e+00 : f32
    %201 = vector.broadcast %cst_76 : f32 to vector<8x128xf32>
    %202 = arith.subf %201, %200 : vector<8x128xf32>
    %203 = math.exp %202 : vector<8x128xf32>
    %cst_77 = arith.constant 1.000000e+00 : f32
    %204 = vector.broadcast %cst_77 : f32 to vector<8x128xf32>
    %205 = arith.addf %204, %203 : vector<8x128xf32>
    %cst_78 = arith.constant 1.000000e+00 : f32
    %206 = vector.broadcast %cst_78 : f32 to vector<8x128xf32>
    %207 = arith.divf %206, %205 : vector<8x128xf32>
    %208 = math.tanh %200 : vector<8x128xf32>
    %209 = vector.extract_strided_slice %207 {offsets = [0, 0], sizes = [8, 32], strides = [1, 1]} : vector<8x128xf32> to vector<8x32xf32>
    %210 = vector.extract_strided_slice %207 {offsets = [0, 32], sizes = [8, 32], strides = [1, 1]} : vector<8x128xf32> to vector<8x32xf32>
    %211 = vector.extract_strided_slice %208 {offsets = [0, 64], sizes = [8, 32], strides = [1, 1]} : vector<8x128xf32> to vector<8x32xf32>
    %212 = vector.extract_strided_slice %207 {offsets = [0, 96], sizes = [8, 32], strides = [1, 1]} : vector<8x128xf32> to vector<8x32xf32>
    %213 = arith.mulf %210, %189 : vector<8x32xf32>
    %214 = arith.mulf %209, %211 : vector<8x32xf32>
    %215 = arith.addf %213, %214 : vector<8x32xf32>
    %216 = math.tanh %215 : vector<8x32xf32>
    %217 = arith.mulf %212, %216 : vector<8x32xf32>
    %218 = arith.index_cast %c7_i32 : i32 to index
    %c0_79 = arith.constant 0 : index
    %c0_80 = arith.constant 0 : index
    %219 = vector.load %arg9[%218, %c0_79, %c0_80] : memref<8x8x32xf32, #tpu.memory_space<vmem>>, vector<1x8x32xf32>
    %220 = vector.shape_cast %219 : vector<1x8x32xf32> to vector<8x32xf32>
    %221 = vector.shape_cast %217 : vector<8x32xf32> to vector<1x8x32xf32>
    tpu.vector_store %arg9[%218, %c0_79, %c0_80], %221 {strides = array<i32>} : memref<8x8x32xf32, #tpu.memory_space<vmem>>, vector<1x8x32xf32>,
    %c8_i32 = arith.constant 8 : i32
    %c0_81 = arith.constant 0 : index
    %c0_82 = arith.constant 0 : index
    %c0_83 = arith.constant 0 : index
    %222 = vector.load %arg9[%c0_81, %c0_82, %c0_83] : memref<8x8x32xf32, #tpu.memory_space<vmem>>, vector<8x8x32xf32>
    %cst_84 = arith.constant dense<0.000000e+00> : vector<8x8xf32>
    %223 = vector.multi_reduction <add>, %222, %cst_84 [2] : vector<8x8x32xf32> to vector<8x8xf32>
    %224 = vector.shape_cast %223 : vector<8x8xf32> to vector<8x8x1xf32>
    %cst_85 = arith.constant 3.200000e+01 : f32
    %225 = vector.broadcast %cst_85 : f32 to vector<8x8x1xf32>
    %226 = arith.divf %224, %225 : vector<8x8x1xf32>
    %227 = vector.broadcast %226 : vector<8x8x1xf32> to vector<8x8x32xf32>
    %228 = arith.subf %222, %227 : vector<8x8x32xf32>
    %229 = arith.mulf %228, %228 : vector<8x8x32xf32>
    %cst_86 = arith.constant dense<0.000000e+00> : vector<8x8xf32>
    %230 = vector.multi_reduction <add>, %229, %cst_86 [2] : vector<8x8x32xf32> to vector<8x8xf32>
    %231 = vector.shape_cast %230 : vector<8x8xf32> to vector<8x8x1xf32>
    %cst_87 = arith.constant 3.200000e+01 : f32
    %232 = vector.broadcast %cst_87 : f32 to vector<8x8x1xf32>
    %233 = arith.divf %231, %232 : vector<8x8x1xf32>
    %cst_88 = arith.constant 9.99999974E-6 : f32
    %234 = vector.broadcast %cst_88 : f32 to vector<8x8x1xf32>
    %235 = arith.addf %233, %234 : vector<8x8x1xf32>
    %236 = math.rsqrt %235 : vector<8x8x1xf32>
    %237 = vector.broadcast %236 : vector<8x8x1xf32> to vector<8x8x32xf32>
    %238 = arith.mulf %228, %237 : vector<8x8x32xf32>
    %239 = vector.shape_cast %3 : vector<1x32xf32> to vector<1x1x32xf32>
    %240 = vector.broadcast %239 : vector<1x1x32xf32> to vector<8x8x32xf32>
    %241 = arith.mulf %238, %240 : vector<8x8x32xf32>
    %242 = vector.shape_cast %4 : vector<1x32xf32> to vector<1x1x32xf32>
    %243 = vector.broadcast %242 : vector<1x1x32xf32> to vector<8x8x32xf32>
    %244 = arith.addf %241, %243 : vector<8x8x32xf32>
    %c0_89 = arith.constant 0 : index
    %c0_90 = arith.constant 0 : index
    %c0_91 = arith.constant 0 : index
    %245 = vector.load %arg7[%c0_89, %c0_90, %c0_91] : memref<8x8x32xf32, #tpu.memory_space<vmem>>, vector<8x8x32xf32>
    tpu.vector_store %arg7[%c0_89, %c0_90, %c0_91], %244 {strides = array<i32>} : memref<8x8x32xf32, #tpu.memory_space<vmem>>, vector<8x8x32xf32>,
    return
  }
  func.func @transform_0(%arg0: i32) -> (i32, i32, i32) {
    %c0_i32 = arith.constant 0 : i32
    %c0_i32_0 = arith.constant 0 : i32
    %c0_i32_1 = arith.constant 0 : i32
    return %c0_i32, %arg0, %c0_i32_0 : i32, i32, i32
  }
  func.func @transform_1(%arg0: i32) -> (i32, i32) {
    %c0_i32 = arith.constant 0 : i32
    %c0_i32_0 = arith.constant 0 : i32
    %c0_i32_1 = arith.constant 0 : i32
    return %c0_i32, %c0_i32_0 : i32, i32
  }
  func.func @transform_2(%arg0: i32) -> (i32, i32) {
    %c0_i32 = arith.constant 0 : i32
    %c0_i32_0 = arith.constant 0 : i32
    %c0_i32_1 = arith.constant 0 : i32
    return %c0_i32, %c0_i32_0 : i32, i32
  }
  func.func @transform_3(%arg0: i32) -> (i32, i32) {
    %c0_i32 = arith.constant 0 : i32
    %c0_i32_0 = arith.constant 0 : i32
    %c0_i32_1 = arith.constant 0 : i32
    return %c0_i32, %c0_i32_0 : i32, i32
  }
  func.func @transform_4(%arg0: i32) -> (i32, i32) {
    %c0_i32 = arith.constant 0 : i32
    %c0_i32_0 = arith.constant 0 : i32
    %c0_i32_1 = arith.constant 0 : i32
    return %c0_i32, %c0_i32_0 : i32, i32
  }
  func.func @transform_5(%arg0: i32) -> (i32, i32) {
    %c0_i32 = arith.constant 0 : i32
    %c0_i32_0 = arith.constant 0 : i32
    %c0_i32_1 = arith.constant 0 : i32
    return %c0_i32, %c0_i32_0 : i32, i32
  }
  func.func @transform_6(%arg0: i32) -> (i32, i32, i32) {
    %c0_i32 = arith.constant 0 : i32
    %c0_i32_0 = arith.constant 0 : i32
    %c0_i32_1 = arith.constant 0 : i32
    return %c0_i32, %arg0, %c0_i32_0 : i32, i32, i32
  }
}

</mosaic_0001>

<bundles_post_ra>
// kernel: layer_norm_lstm.2
= control target key start
LH: loop header
LB: loop body
LE: loop exit
PB: predicated region body
PF: predicated region fallthrough
CT: control target
= control target key end

     0   :  { %vm46_vm0 = vcmask 130048   ;;  %v1486_v0 = vmov 0.0|0.0   ;;  %vm1487_vm1 = vmmov 0   ;;  %v1488_v4 = vmov 0.0   ;;  %s1489_s13 = smov 64   ;;  %s1800_s1 = inlined_call_operand.vmem [shape: f32[16,128], index: 1, kind: input, shape index: {}]   ;;  %s1801_s2 = inlined_call_operand.vmem [shape: f32[32,128], index: 2, kind: input, shape index: {}]   ;;  %s1802_s0 = inlined_call_operand.vmem [shape: f32[8,8,16], index: 0, kind: input, shape index: {}]   ;;  %s1803_s3 = inlined_call_operand.vmem [shape: f32[1,128], index: 3, kind: input, shape index: {}]   ;;  %s1804_s4 = inlined_call_operand.vmem [shape: f32[1,32], index: 4, kind: input, shape index: {}]   ;;  %s1805_s5 = inlined_call_operand.vmem [shape: f32[1,32], index: 5, kind: input, shape index: {}]   ;;  %s1806_s6 = inlined_call_operand.vmem [shape: f32[8,8,32], index: 6, kind: output, shape index: {}]  }
   0x1   :  { %1353 = vmatprep.subr.bf16.mxu1 %v1486_v0  ;;  %v23_v1 = vld [vmem:[%s1800_s1] sm:$0xff]  ;;  %v24_v2 = vld [vmem:[%s1800_s1 + $0x8] sm:$0xff]  ;;  %1269 = vmatprep.mubr.msk.f32.mxu1 %vm1487_vm1, %v1488_v4  ;;  %v27_v9 = vld [vmem:[%s1801_s2 + $0x10] sm:$0xff]  ;;  %vm185_vm2 = vcmask 261120  }
   0x2   :  { %v25_v3 = vld [vmem:[%s1801_s2] sm:$0xff]  ;;  %v1349_v5 = vpack.c.bf16 %v24_v2, %v23_v1  ;;  %v26_v6 = vld [vmem:[%s1801_s2 + $0x8] sm:$0xff]  ;;  %v28_v10 = vld [vmem:[%s1801_s2 + $0x18] sm:$0xff] }
   0x3   :  { %v32_v7 = vld [vmem:[%s1802_s0] sm:$0xff]  ;;  %v1544_v8 = vpack.c.bf16 %v26_v6, %v25_v3  ;;  %v33_v11 = vld [vmem:[%s1802_s0 + $0x8] sm:$0xff]  ;;  %v1557_v12 = vpack.c.bf16 %v28_v10, %v27_v9  ;;  %v34_v50 = vld [vmem:[%s1802_s0 + $0x10] sm:$0xff] }
   0x4   :  { %1249 = vmatprep.mubr.msk.f32.mxu0 %vm46_vm0, %v32_v7  ;;  %1350 = vmatprep.subr.bf16.mxu0 %v1349_v5  ;;  %v1578_v13 = vld [vmem:[%s1803_s3] ss:$0 sm:$0xff]  ;;  %s1490_s3 = smov 32   ;;  %v35_v51 = vld [vmem:[%s1802_s0 + $0x18] sm:$0xff]  ;;  %v37_v53 = vld [vmem:[%s1802_s0 + $0x28] sm:$0xff] }
   0x5   :  { %1355 = vmatpush3.bf16.msra.mxu1 %v1544_v8  ;;  %1352 = vmatpush3.bf16.msra.mxu0 %v1349_v5  ;;  %v36_v52 = vld [vmem:[%s1802_s0 + $0x20] sm:$0xff]  ;;  %v38_v54 = vld [vmem:[%s1802_s0 + $0x30] sm:$0xff]  ;;  %v39_v55 = vld [vmem:[%s1802_s0 + $0x38] sm:$0xff] }
   0x6   :  { %1356 = vmatprep.subr.bf16.mxu1 %v1486_v0  ;;  %1365 = vmatprep.subr.bf16.mxu0 %v1486_v0 }
   0x8   :  { %1250 = vmatmul.mubr.msk.f32.vlgmr.msra.gmra.mrb[0].mxu0 %vm46_vm0, %v33_v11 }
   0x9   :  { %1358 = vmatpush3.bf16.msra.mxu1 %v1557_v12  ;;  %1367 = vmatpush3.bf16.msra.mxu0 %v1544_v8 }
   0xa   :  { %1359 = vmatprep.subr.bf16.mxu1 %v1486_v0  ;;  %1368 = vmatprep.subr.bf16.mxu0 %v1486_v0 }
   0xb   :  { %1252 = vmatprep.mubr.msk.f32.mxu0 %vm46_vm0, %v34_v50 }
   0xc   :  { %1270 = vmatmul.mubr.f32.vlgmr.msra.gmra.mrb[0].mxu1 %v1488_v4  ;;  %1253 = vmatmul.mubr.msk.f32.gmra.mrb[2].mxu0 %vm46_vm0, %v35_v51 }
   0xd   :  { %1361 = vmatpush3.bf16.msra.mxu1 %v1544_v8  ;;  %1280 = vmatprep.mubr.msk.f32.mxu1 %vm1487_vm1, %v1488_v4 }
   0xe   :  { %1362 = vmatprep.subr.bf16.mxu1 %v1486_v0  ;;  %1370 = vmatpush3.bf16.msra.mxu0 %v1557_v12 }
   0xf   :  { %1377 = vmatprep.subr.bf16.mxu0 %v1486_v0  ;;  %1255 = vmatprep.mubr.msk.f32.mxu0 %vm46_vm0, %v36_v52 }
  0x10   :  { %1256 = vmatmul.mubr.msk.f32.gmra.mrb[4].mxu0 %vm46_vm0, %v37_v53 }
  0x11   :  { %1364 = vmatpush3.bf16.msra.mxu1 %v1557_v12  ;;  %1258 = vmatprep.mubr.msk.f32.mxu0 %vm46_vm0, %v38_v54 }
  0x12   :  { %1371 = vmatprep.subr.bf16.mxu1 %v1486_v0 }
  0x14   :  { %1259 = vmatmul.mubr.msk.f32.gmra.mrb[6].mxu0 %vm46_vm0, %v39_v55 }
  0x15   :  { %1291 = vmatprep.mubr.msk.f32.mxu0 %vm1487_vm1, %v1488_v4 }
  0xdb   :  { %v1251_v14 = vpop.f32.mrb[0].mxu0 }
  0xdc   :  { %v137_v15 = vpop.f32.mrb[1].mxu0  ;;  %v143_v35 = vadd.f32 %v1251_v14, %v1578_v13 }
  0xdd   :  { %v138_v16 = vadd.f32 %v1578_v13, %v137_v15 }
  0xdf   :  { %v255_v17 = vpop.f32.mrb[0].mxu1  ;;  %v1254_v59 = vpop.f32.mrb[2].mxu0 }
  0xe0   :  { %v259_v18 = vadd.f32 %v255_v17, %v138_v16  ;;  %v1271_v19 = vpop.f32.mrb[1].mxu1  ;;  %v147_v60 = vpop.f32.mrb[3].mxu0 }
  0xe1   :  { %v148_v3 = vadd.f32 %v1578_v13, %v147_v60 }
  0xe2   :  { %1406 = vtanh.f32 %v259_v18  ;;  %v260_v21 = vsub.f32 0.0, %v259_v18 }
  0xe3   :  { %v1624_v61 = vpop.f32.mrb[4].mxu0 }
  0xe4   :  { %v261_v22 = vmul.f32 1.442695, %v260_v21  ;;  %v1626_v62 = vpop.f32.mrb[5].mxu0 }
  0xe6   :  { %1408 = vpow2.f32 %v261_v22 }
  0xe7   :  { %v1628_v63 = vpop.f32.mrb[6].mxu0 }
  0xe8   :  { %v1630_v1 = vpop.f32.mrb[7].mxu0 }
  0xec   :  { %v1407_v20 = vpop.eup %1406 }
  0xed   :  { %269 = vrot.lane.b32.xlu0 %v1407_v20, %s1489_s13 }
  0xf0   :  { %v1409_v23 = vpop.eup %1408 }
  0xf1   :  { %v263_v24 = vadd.f32 1.0, %v1409_v23 }
  0xf3   :  { %1410 = vrcp.f32 %v263_v24 }
  0xfd   :  { %v1411_v25 = vpop.eup %1410 }
  0xfe   :  { %v267_v28 = vmul.f32 0.0, %v1411_v25 }
 0x15f   :  { %v270_v26 = vpop.permute.xlu0 %269 }
 0x160   :  { %v272_v27 = vmul.f32 %v1411_v25, %v270_v26  ;;  %v153_v26 = vadd.f32 %v1254_v59, %v1578_v13 }
 0x162   :  { %274 = vrot.lane.b32.xlu0 %v272_v27, %s1490_s3 }
 0x1d4   :  { %v275_v29 = vpop.permute.xlu0 %274 }
 0x1d5   :  { %v277_v30 = vadd.f32 %v275_v29, %v267_v28 }
 0x1d7   :  { %1412 = vtanh.f32 %v277_v30 }
 0x1e1   :  { %v1413_v31 = vpop.eup %1412 }
 0x1e2   :  { %280 = vrot.lane.b32.xlu1 %v1413_v31, %s1489_s13 }
 0x254   :  { %v281_v32 = vpop.permute.xlu1 %280 }
 0x255   :  { %v283_v33 = vmul.f32 %v1411_v25, %v281_v32 }
 0x257   :  { %285 = vrot.lane.b32.xlu1 %v283_v33, %s1490_s3 }
 0x2c9   :  { %v286_v34 = vpop.permute.xlu1 %285 }
 0x2ca   :  { %288 = vst.msk [vmem:[#allocation3] sm:$0xff] %vm185_vm2, %v286_v34  ;;  %1281 = vmatmul.mubr.msk.f32.vlgmr.msra.gmra.mrb[2].mxu1 %vm185_vm2, %v286_v34 }
 0x2cb   :  { %1373 = vmatpush3.bf16.msra.mxu1 %v1544_v8  ;;  %1302 = vmatprep.mubr.msk.f32.mxu1 %vm1487_vm1, %v1488_v4 }
 0x2cc   :  { %1374 = vmatprep.subr.bf16.mxu1 %v1486_v0 }
 0x2cf   :  { %1376 = vmatpush3.bf16.msra.mxu1 %v1557_v12 }
 0x2d0   :  { %1383 = vmatprep.subr.bf16.mxu1 %v1486_v0 }
 0x39d   :  { %v359_v36 = vpop.f32.mrb[2].mxu1 }
 0x39e   :  { %v363_v37 = vadd.f32 %v359_v36, %v143_v35  ;;  %v1282_v38 = vpop.f32.mrb[3].mxu1 }
 0x3a0   :  { %1414 = vtanh.f32 %v363_v37  ;;  %v364_v40 = vsub.f32 0.0, %v363_v37 }
 0x3a2   :  { %v365_v41 = vmul.f32 1.442695, %v364_v40 }
 0x3a4   :  { %1416 = vpow2.f32 %v365_v41 }
 0x3aa   :  { %v1415_v39 = vpop.eup %1414 }
 0x3ab   :  { %373 = vrot.lane.b32.xlu0 %v1415_v39, %s1489_s13 }
 0x3ae   :  { %v1417_v42 = vpop.eup %1416 }
 0x3af   :  { %v367_v43 = vadd.f32 1.0, %v1417_v42 }
 0x3b1   :  { %1418 = vrcp.f32 %v367_v43 }
 0x3bb   :  { %v1419_v44 = vpop.eup %1418 }
 0x3bc   :  { %v371_v47 = vmul.f32 %v1419_v44, %v277_v30 }
 0x41d   :  { %v374_v45 = vpop.permute.xlu0 %373 }
 0x41e   :  { %v376_v46 = vmul.f32 %v1419_v44, %v374_v45  ;;  %v158_v45 = vadd.f32 %v1578_v13, %v1626_v62 }
 0x420   :  { %378 = vrot.lane.b32.xlu1 %v376_v46, %s1490_s3 }
 0x492   :  { %v379_v48 = vpop.permute.xlu1 %378 }
 0x493   :  { %v381_v49 = vadd.f32 %v379_v48, %v371_v47 }
 0x495   :  { %1420 = vtanh.f32 %v381_v49 }
 0x49f   :  { %v1421_v56 = vpop.eup %1420 }
 0x4a0   :  { %384 = vrot.lane.b32.xlu0 %v1421_v56, %s1489_s13 }
 0x512   :  { %v385_v57 = vpop.permute.xlu0 %384 }
 0x513   :  { %v387_v58 = vmul.f32 %v1419_v44, %v385_v57 }
 0x515   :  { %389 = vrot.lane.b32.xlu1 %v387_v58, %s1490_s3 }
 0x587   :  { %v390_v2 = vpop.permute.xlu1 %389 }
 0x588   :  { %393 = vst.msk [vmem:[#allocation3 + $0x8] sm:$0xff] %vm185_vm2, %v390_v2  ;;  %1292 = vmatmul.mubr.msk.f32.vlgmr.msra.gmra.mrb[8].mxu0 %vm185_vm2, %v390_v2 }
 0x589   :  { %1379 = vmatpush3.bf16.msra.mxu0 %v1544_v8  ;;  %1313 = vmatprep.mubr.msk.f32.mxu0 %vm1487_vm1, %v1488_v4 }
 0x58a   :  { %1380 = vmatprep.subr.bf16.mxu0 %v1486_v0 }
 0x58d   :  { %1382 = vmatpush3.bf16.msra.mxu0 %v1557_v12 }
 0x58e   :  { %1389 = vmatprep.subr.bf16.mxu0 %v1486_v0 }
 0x65b   :  { %v464_v5 = vpop.f32.mrb[8].mxu0 }
 0x65c   :  { %v468_v6 = vadd.f32 %v464_v5, %v148_v3  ;;  %v1293_v7 = vpop.f32.mrb[9].mxu0  ;;  %v163_v5 = vadd.f32 %v1624_v61, %v1578_v13 }
 0x65e   :  { %1422 = vtanh.f32 %v468_v6  ;;  %v469_v10 = vsub.f32 0.0, %v468_v6 }
 0x660   :  { %v470_v11 = vmul.f32 1.442695, %v469_v10 }
 0x662   :  { %1424 = vpow2.f32 %v470_v11 }
 0x668   :  { %v1423_v9 = vpop.eup %1422 }
 0x669   :  { %478 = vrot.lane.b32.xlu0 %v1423_v9, %s1489_s13 }
 0x66c   :  { %v1425_v14 = vpop.eup %1424 }
 0x66d   :  { %v472_v15 = vadd.f32 1.0, %v1425_v14 }
 0x66f   :  { %1426 = vrcp.f32 %v472_v15 }
 0x679   :  { %v1427_v16 = vpop.eup %1426 }
 0x67a   :  { %v476_v19 = vmul.f32 %v1427_v16, %v381_v49 }
 0x6db   :  { %v479_v17 = vpop.permute.xlu0 %478 }
 0x6dc   :  { %v481_v18 = vmul.f32 %v1427_v16, %v479_v17 }
 0x6de   :  { %483 = vrot.lane.b32.xlu1 %v481_v18, %s1490_s3 }
 0x750   :  { %v484_v20 = vpop.permute.xlu1 %483 }
 0x751   :  { %v486_v21 = vadd.f32 %v484_v20, %v476_v19 }
 0x753   :  { %1428 = vtanh.f32 %v486_v21 }
 0x75d   :  { %v1429_v22 = vpop.eup %1428 }
 0x75e   :  { %489 = vrot.lane.b32.xlu0 %v1429_v22, %s1489_s13  ;;  %v168_v22 = vadd.f32 %v1578_v13, %v1630_v1 }
 0x7d0   :  { %v490_v23 = vpop.permute.xlu0 %489 }
 0x7d1   :  { %v492_v24 = vmul.f32 %v1427_v16, %v490_v23 }
 0x7d3   :  { %494 = vrot.lane.b32.xlu1 %v492_v24, %s1490_s3 }
 0x845   :  { %v495_v25 = vpop.permute.xlu1 %494 }
 0x846   :  { %498 = vst.msk [vmem:[#allocation3 + $0x10] sm:$0xff] %vm185_vm2, %v495_v25  ;;  %1303 = vmatmul.mubr.msk.f32.vlgmr.msra.gmra.mrb[4].mxu1 %vm185_vm2, %v495_v25 }
 0x847   :  { %1385 = vmatpush3.bf16.msra.mxu1 %v1544_v8  ;;  %1324 = vmatprep.mubr.msk.f32.mxu1 %vm1487_vm1, %v1488_v4 }
 0x848   :  { %1386 = vmatprep.subr.bf16.mxu1 %v1486_v0 }
 0x84b   :  { %1388 = vmatpush3.bf16.msra.mxu1 %v1557_v12 }
 0x84c   :  { %1395 = vmatprep.subr.bf16.mxu1 %v1486_v0 }
 0x919   :  { %v569_v27 = vpop.f32.mrb[4].mxu1 }
 0x91a   :  { %v573_v28 = vadd.f32 %v569_v27, %v153_v26  ;;  %v1304_v29 = vpop.f32.mrb[5].mxu1 }
 0x91c   :  { %1430 = vtanh.f32 %v573_v28  ;;  %v574_v31 = vsub.f32 0.0, %v573_v28 }
 0x91e   :  { %v575_v32 = vmul.f32 1.442695, %v574_v31 }
 0x920   :  { %1432 = vpow2.f32 %v575_v32 }
 0x926   :  { %v1431_v30 = vpop.eup %1430 }
 0x927   :  { %583 = vrot.lane.b32.xlu0 %v1431_v30, %s1489_s13 }
 0x92a   :  { %v1433_v33 = vpop.eup %1432 }
 0x92b   :  { %v577_v34 = vadd.f32 1.0, %v1433_v33 }
 0x92d   :  { %1434 = vrcp.f32 %v577_v34 }
 0x937   :  { %v1435_v35 = vpop.eup %1434 }
 0x938   :  { %v581_v38 = vmul.f32 %v1435_v35, %v486_v21 }
 0x999   :  { %v584_v36 = vpop.permute.xlu0 %583 }
 0x99a   :  { %v586_v37 = vmul.f32 %v1435_v35, %v584_v36 }
 0x99c   :  { %588 = vrot.lane.b32.xlu1 %v586_v37, %s1490_s3 }
 0xa0e   :  { %v589_v39 = vpop.permute.xlu1 %588 }
 0xa0f   :  { %v591_v40 = vadd.f32 %v589_v39, %v581_v38 }
 0xa11   :  { %1436 = vtanh.f32 %v591_v40 }
 0xa1b   :  { %v1437_v41 = vpop.eup %1436 }
 0xa1c   :  { %594 = vrot.lane.b32.xlu0 %v1437_v41, %s1489_s13 }
 0xa8e   :  { %v595_v42 = vpop.permute.xlu0 %594 }
 0xa8f   :  { %v597_v43 = vmul.f32 %v1435_v35, %v595_v42 }
 0xa91   :  { %599 = vrot.lane.b32.xlu1 %v597_v43, %s1490_s3 }
 0xb03   :  { %v600_v44 = vpop.permute.xlu1 %599 }
 0xb04   :  { %603 = vst.msk [vmem:[#allocation3 + $0x18] sm:$0xff] %vm185_vm2, %v600_v44  ;;  %1314 = vmatmul.mubr.msk.f32.vlgmr.msra.gmra.mrb[10].mxu0 %vm185_vm2, %v600_v44 }
 0xb05   :  { %1391 = vmatpush3.bf16.msra.mxu0 %v1544_v8  ;;  %1335 = vmatprep.mubr.msk.f32.mxu0 %vm1487_vm1, %v1488_v4 }
 0xb06   :  { %1392 = vmatprep.subr.bf16.mxu0 %v1486_v0 }
 0xb09   :  { %1394 = vmatpush3.bf16.msra.mxu0 %v1557_v12 }
 0xbd7   :  { %v674_v46 = vpop.f32.mrb[10].mxu0 }
 0xbd8   :  { %v678_v47 = vadd.f32 %v674_v46, %v158_v45  ;;  %v1315_v48 = vpop.f32.mrb[11].mxu0 }
 0xbda   :  { %1438 = vtanh.f32 %v678_v47  ;;  %v679_v50 = vsub.f32 0.0, %v678_v47 }
 0xbdc   :  { %v680_v51 = vmul.f32 1.442695, %v679_v50 }
 0xbde   :  { %1440 = vpow2.f32 %v680_v51 }
 0xbe4   :  { %v1439_v49 = vpop.eup %1438 }
 0xbe5   :  { %688 = vrot.lane.b32.xlu0 %v1439_v49, %s1489_s13 }
 0xbe8   :  { %v1441_v52 = vpop.eup %1440 }
 0xbe9   :  { %v682_v53 = vadd.f32 1.0, %v1441_v52 }
 0xbeb   :  { %1442 = vrcp.f32 %v682_v53 }
 0xbf5   :  { %v1443_v54 = vpop.eup %1442 }
 0xbf6   :  { %v686_v57 = vmul.f32 %v1443_v54, %v591_v40  ;;  %v173_v40 = vadd.f32 %v1628_v63, %v1578_v13 }
 0xc57   :  { %v689_v55 = vpop.permute.xlu0 %688 }
 0xc58   :  { %v691_v56 = vmul.f32 %v1443_v54, %v689_v55 }
 0xc5a   :  { %693 = vrot.lane.b32.xlu1 %v691_v56, %s1490_s3  ;;  %v1026_v56 = vld [vmem:[#allocation3 + $0x10] sm:$0xff] }
 0xccc   :  { %v694_v58 = vpop.permute.xlu1 %693 }
 0xccd   :  { %v696_v59 = vadd.f32 %v694_v58, %v686_v57  ;;  %v1038_v57 = vsel %vm185_vm2, %v1026_v56, 0.0  ;;  %v1027_v58 = vld [vmem:[#allocation3 + $0x18] sm:$0xff] }
 0xccf   :  { %1444 = vtanh.f32 %v696_v59 }
 0xcd9   :  { %v1445_v60 = vpop.eup %1444 }
 0xcda   :  { %699 = vrot.lane.b32.xlu0 %v1445_v60, %s1489_s13 }
 0xd4c   :  { %v700_v62 = vpop.permute.xlu0 %699 }
 0xd4d   :  { %v702_v2 = vmul.f32 %v1443_v54, %v700_v62  ;;  %v1024_v54 = vld [vmem:[#allocation3] sm:$0xff] }
 0xd4e   :  { %v1032_v55 = vsel %vm185_vm2, %v1024_v54, 0.0 }
 0xd4f   :  { %704 = vrot.lane.b32.xlu1 %v702_v2, %s1490_s3 }
 0xdc1   :  { %v705_v3 = vpop.permute.xlu1 %704 }
 0xdc2   :  { %708 = vst.msk [vmem:[#allocation3 + $0x20] sm:$0xff] %vm185_vm2, %v705_v3  ;;  %1325 = vmatmul.mubr.msk.f32.vlgmr.msra.gmra.mrb[6].mxu1 %vm185_vm2, %v705_v3 }
 0xdc3   :  { %1397 = vmatpush3.bf16.msra.mxu1 %v1544_v8  ;;  %1346 = vmatprep.mubr.msk.f32.mxu1 %vm1487_vm1, %v1488_v4 }
 0xdc4   :  { %1398 = vmatprep.subr.bf16.mxu1 %v1486_v0 }
 0xdc7   :  { %1400 = vmatpush3.bf16.msra.mxu1 %v1557_v12 }
 0xe95   :  { %v779_v6 = vpop.f32.mrb[6].mxu1 }
 0xe96   :  { %v783_v7 = vadd.f32 %v779_v6, %v163_v5  ;;  %v1326_v9 = vpop.f32.mrb[7].mxu1  ;;  %v1025_v5 = vld [vmem:[#allocation3 + $0x8] sm:$0xff] }
 0xe97   :  { %v1035_v6 = vsel %vm185_vm2, %v1025_v5, 0.0 }
 0xe98   :  { %1446 = vtanh.f32 %v783_v7  ;;  %v784_v11 = vsub.f32 0.0, %v783_v7  ;;  %v1028_v7 = vld [vmem:[#allocation3 + $0x20] sm:$0xff] }
 0xe99   :  { %v1044_v9 = vsel %vm185_vm2, %v1028_v7, 0.0 }
 0xe9a   :  { %v785_v14 = vmul.f32 1.442695, %v784_v11 }
 0xe9c   :  { %1448 = vpow2.f32 %v785_v14 }
 0xea2   :  { %v1447_v10 = vpop.eup %1446 }
 0xea3   :  { %793 = vrot.lane.b32.xlu0 %v1447_v10, %s1489_s13 }
 0xea6   :  { %v1449_v8 = vpop.eup %1448 }
 0xea7   :  { %v787_v15 = vadd.f32 1.0, %v1449_v8 }
 0xea9   :  { %1450 = vrcp.f32 %v787_v15 }
 0xeb3   :  { %v1451_v4 = vpop.eup %1450 }
 0xeb4   :  { %v791_v12 = vmul.f32 %v1451_v4, %v696_v59  ;;  %v1041_v59 = vsel %vm185_vm2, %v1027_v58, 0.0 }
 0xf15   :  { %v794_v0 = vpop.permute.xlu0 %793 }
 0xf16   :  { %v796_v16 = vmul.f32 %v1451_v4, %v794_v0 }
 0xf18   :  { %798 = vrot.lane.b32.xlu1 %v796_v16, %s1490_s3 }
 0xf8a   :  { %v799_v61 = vpop.permute.xlu1 %798 }
 0xf8b   :  { %v801_v17 = vadd.f32 %v799_v61, %v791_v12 }
 0xf8d   :  { %1452 = vtanh.f32 %v801_v17 }
 0xf97   :  { %v1453_v18 = vpop.eup %1452 }
 0xf98   :  { %804 = vrot.lane.b32.xlu0 %v1453_v18, %s1489_s13 }
0x100a   :  { %v805_v19 = vpop.permute.xlu0 %804 }
0x100b   :  { %v807_v20 = vmul.f32 %v1451_v4, %v805_v19 }
0x100d   :  { %809 = vrot.lane.b32.xlu1 %v807_v20, %s1490_s3 }
0x107f   :  { %v810_v21 = vpop.permute.xlu1 %809 }
0x1080   :  { %813 = vst.msk [vmem:[#allocation3 + $0x28] sm:$0xff] %vm185_vm2, %v810_v21  ;;  %1336 = vmatmul.mubr.msk.f32.vlgmr.msra.gmra.mrb[12].mxu0 %vm185_vm2, %v810_v21 }
0x1087   :  { %v1029_v60 = vld [vmem:[#allocation3 + $0x28] sm:$0xff] }
0x1088   :  { %v1047_v62 = vsel %vm185_vm2, %v1029_v60, 0.0 }
0x1153   :  { %v884_v23 = vpop.f32.mrb[12].mxu0 }
0x1154   :  { %v888_v24 = vadd.f32 %v884_v23, %v168_v22  ;;  %v1337_v25 = vpop.f32.mrb[13].mxu0 }
0x1156   :  { %1454 = vtanh.f32 %v888_v24  ;;  %v889_v27 = vsub.f32 0.0, %v888_v24 }
0x1158   :  { %v890_v28 = vmul.f32 1.442695, %v889_v27 }
0x115a   :  { %1456 = vpow2.f32 %v890_v28 }
0x1160   :  { %v1455_v26 = vpop.eup %1454 }
0x1161   :  { %898 = vrot.lane.b32.xlu0 %v1455_v26, %s1489_s13 }
0x1164   :  { %v1457_v29 = vpop.eup %1456 }
0x1165   :  { %v892_v30 = vadd.f32 1.0, %v1457_v29 }
0x1167   :  { %1458 = vrcp.f32 %v892_v30 }
0x1171   :  { %v1459_v31 = vpop.eup %1458 }
0x1172   :  { %v896_v34 = vmul.f32 %v1459_v31, %v801_v17 }
0x11d3   :  { %v899_v32 = vpop.permute.xlu0 %898 }
0x11d4   :  { %v901_v33 = vmul.f32 %v1459_v31, %v899_v32 }
0x11d6   :  { %903 = vrot.lane.b32.xlu1 %v901_v33, %s1490_s3 }
0x1248   :  { %v904_v1 = vpop.permute.xlu1 %903 }
0x1249   :  { %v906_v35 = vadd.f32 %v904_v1, %v896_v34 }
0x124b   :  { %1460 = vtanh.f32 %v906_v35 }
0x1255   :  { %v1461_v36 = vpop.eup %1460 }
0x1256   :  { %909 = vrot.lane.b32.xlu0 %v1461_v36, %s1489_s13 }
0x12c8   :  { %v910_v37 = vpop.permute.xlu0 %909 }
0x12c9   :  { %v912_v38 = vmul.f32 %v1459_v31, %v910_v37 }
0x12cb   :  { %914 = vrot.lane.b32.xlu1 %v912_v38, %s1490_s3 }
0x133d   :  { %v915_v39 = vpop.permute.xlu1 %914 }
0x133e   :  { %918 = vst.msk [vmem:[#allocation3 + $0x30] sm:$0xff] %vm185_vm2, %v915_v39  ;;  %1347 = vmatmul.mubr.msk.f32.vlgmr.msra.gmra.mrb[8].mxu1 %vm185_vm2, %v915_v39 }
0x1345   :  { %v1030_v10 = vld [vmem:[#allocation3 + $0x30] sm:$0xff] }
0x1346   :  { %v1050_v11 = vsel %vm185_vm2, %v1030_v10, 0.0 }
0x1411   :  { %v989_v41 = vpop.f32.mrb[8].mxu1 }
0x1412   :  { %v993_v42 = vadd.f32 %v989_v41, %v173_v40  ;;  %v1348_v43 = vpop.f32.mrb[9].mxu1 }
0x1414   :  { %1462 = vtanh.f32 %v993_v42  ;;  %v994_v45 = vsub.f32 0.0, %v993_v42 }
0x1416   :  { %v995_v46 = vmul.f32 1.442695, %v994_v45 }
0x1418   :  { %1464 = vpow2.f32 %v995_v46 }
0x141e   :  { %v1463_v44 = vpop.eup %1462 }
0x141f   :  { %1003 = vrot.lane.b32.xlu0 %v1463_v44, %s1489_s13 }
0x1422   :  { %v1465_v47 = vpop.eup %1464 }
0x1423   :  { %v997_v48 = vadd.f32 1.0, %v1465_v47 }
0x1425   :  { %1466 = vrcp.f32 %v997_v48 }
0x142f   :  { %v1467_v49 = vpop.eup %1466 }
0x1430   :  { %v1001_v52 = vmul.f32 %v1467_v49, %v906_v35 }
0x1491   :  { %v1004_v50 = vpop.permute.xlu0 %1003 }
0x1492   :  { %v1006_v51 = vmul.f32 %v1467_v49, %v1004_v50 }
0x1494   :  { %1008 = vrot.lane.b32.xlu1 %v1006_v51, %s1490_s3 }
0x1506   :  { %v1009_v13 = vpop.permute.xlu1 %1008 }
0x1507   :  { %v1011_v63 = vadd.f32 %v1009_v13, %v1001_v52  ;;  %v1739_v13 = vld [vmem:[%s1804_s4] ss:$0 sm:$0xff] }
0x1509   :  { %1468 = vtanh.f32 %v1011_v63 }
0x1513   :  { %v1469_v53 = vpop.eup %1468 }
0x1514   :  { %1014 = vrot.lane.b32.xlu0 %v1469_v53, %s1489_s13  ;;  %v1744_v53 = vld [vmem:[%s1805_s5] ss:$0 sm:$0xff] }
0x1533   :  { %1033 = vadd.xlane.f32.xlu0 %v1032_v55 }
0x1537   :  { %1039 = vadd.xlane.f32.xlu0 %v1038_v57 }
0x153b   :  { %1042 = vadd.xlane.f32.xlu0 %v1041_v59 }
0x153f   :  { %1048 = vadd.xlane.f32.xlu0 %v1047_v62 }
0x1586   :  { %v1015_v2 = vpop.permute.xlu0 %1014 }
0x1587   :  { %v1017_v3 = vmul.f32 %v1467_v49, %v1015_v2 }
0x1589   :  { %1019 = vrot.lane.b32.xlu1 %v1017_v3, %s1490_s3 }
0x15ad   :  { %1036 = vadd.xlane.f32.xlu1 %v1035_v6 }
0x15b1   :  { %1045 = vadd.xlane.f32.xlu1 %v1044_v9 }
0x15b5   :  { %1051 = vadd.xlane.f32.xlu1 %v1050_v11 }
0x15c0   :  { %v1034_v14 = vpop.xlane.xlu0 %1033 }
0x15c1   :  { %v1057_v8 = vmul.f32 0.03125, %v1034_v14 }
0x15c3   :  { %v1065_v15 = vsub.f32 %v1024_v54, %v1057_v8 }
0x15c4   :  { %v1040_v4 = vpop.xlane.xlu0 %1039 }
0x15c5   :  { %v1059_v0 = vmul.f32 0.03125, %v1040_v4  ;;  %v1073_v16 = vmul.f32 %v1065_v15, %v1065_v15 }
0x15c7   :  { %v1067_v12 = vsub.f32 %v1026_v56, %v1059_v0  ;;  %v1081_v61 = vsel %vm185_vm2, %v1073_v16, 0.0 }
0x15c8   :  { %1082 = vadd.xlane.f32.xlu1 %v1081_v61  ;;  %v1043_v22 = vpop.xlane.xlu0 %1042 }
0x15c9   :  { %v1075_v17 = vmul.f32 %v1067_v12, %v1067_v12  ;;  %v1060_v23 = vmul.f32 0.03125, %v1043_v22 }
0x15cb   :  { %v1087_v18 = vsel %vm185_vm2, %v1075_v17, 0.0  ;;  %v1711_v27 = vsub.f32 %v1027_v58, %v1060_v23 }
0x15cc   :  { %1088 = vadd.xlane.f32.xlu1 %v1087_v18  ;;  %v1049_v24 = vpop.xlane.xlu0 %1048 }
0x15cd   :  { %v1062_v28 = vmul.f32 0.03125, %v1049_v24  ;;  %v1076_v35 = vmul.f32 %v1711_v27, %v1711_v27 }
0x15cf   :  { %v1717_v33 = vsub.f32 %v1029_v60, %v1062_v28  ;;  %v1090_v41 = vsel %vm185_vm2, %v1076_v35, 0.0 }
0x15d1   :  { %v1078_v42 = vmul.f32 %v1717_v33, %v1717_v33 }
0x15d3   :  { %v1096_v45 = vsel %vm185_vm2, %v1078_v42, 0.0 }
0x15fb   :  { %v1020_v19 = vpop.permute.xlu1 %1019 }
0x15fc   :  { %1023 = vst.msk [vmem:[#allocation3 + $0x38] sm:$0xff] %vm185_vm2, %v1020_v19 }
0x1603   :  { %v1031_v20 = vld [vmem:[#allocation3 + $0x38] sm:$0xff] }
0x1604   :  { %v1053_v21 = vsel %vm185_vm2, %v1031_v20, 0.0 }
0x1605   :  { %1054 = vadd.xlane.f32.xlu0 %v1053_v21 }
0x163a   :  { %v1037_v25 = vpop.xlane.xlu1 %1036 }
0x163b   :  { %v1058_v26 = vmul.f32 0.03125, %v1037_v25 }
0x163d   :  { %v1713_v29 = vsub.f32 %v1025_v5, %v1058_v26 }
0x163e   :  { %v1046_v30 = vpop.xlane.xlu1 %1045 }
0x163f   :  { %v1061_v31 = vmul.f32 0.03125, %v1046_v30  ;;  %v1074_v32 = vmul.f32 %v1713_v29, %v1713_v29 }
0x1641   :  { %v1719_v34 = vsub.f32 %v1028_v7, %v1061_v31  ;;  %v1084_v1 = vsel %vm185_vm2, %v1074_v32, 0.0 }
0x1642   :  { %v1052_v36 = vpop.xlane.xlu1 %1051  ;;  %1085 = vadd.xlane.f32.xlu0 %v1084_v1 }
0x1643   :  { %v1063_v37 = vmul.f32 0.03125, %v1052_v36  ;;  %v1077_v38 = vmul.f32 %v1719_v34, %v1719_v34 }
0x1645   :  { %v1726_v39 = vsub.f32 %v1030_v10, %v1063_v37  ;;  %v1093_v40 = vsel %vm185_vm2, %v1077_v38, 0.0 }
0x1646   :  { %1094 = vadd.xlane.f32.xlu1 %v1093_v40  ;;  %1091 = vadd.xlane.f32.xlu0 %v1090_v41 }
0x1647   :  { %v1079_v43 = vmul.f32 %v1726_v39, %v1726_v39 }
0x1649   :  { %v1099_v44 = vsel %vm185_vm2, %v1079_v43, 0.0 }
0x164a   :  { %1100 = vadd.xlane.f32.xlu1 %v1099_v44  ;;  %1097 = vadd.xlane.f32.xlu0 %v1096_v45 }
0x1655   :  { %v1083_v46 = vpop.xlane.xlu1 %1082 }
0x1656   :  { %v1105_v47 = vmul.f32 0.03125, %v1083_v46 }
0x1658   :  { %v1113_v48 = vadd.f32 1e-05, %v1105_v47 }
0x1659   :  { %v1089_v49 = vpop.xlane.xlu1 %1088 }
0x165a   :  { %1470 = vrsqrt.f32 %v1113_v48  ;;  %v1107_v50 = vmul.f32 0.03125, %v1089_v49 }
0x165c   :  { %v1115_v51 = vadd.f32 1e-05, %v1107_v50 }
0x165e   :  { %1472 = vrsqrt.f32 %v1115_v51 }
0x1664   :  { %v1471_v52 = vpop.eup %1470 }
0x1665   :  { %v1129_v63 = vmul.f32 %v1471_v52, %v1065_v15 }
0x1667   :  { %v1143_v54 = vmul.f32 %v1739_v13, %v1129_v63 }
0x1668   :  { %v1473_v55 = vpop.eup %1472 }
0x1669   :  { %v1157_v56 = vadd.f32 %v1744_v53, %v1143_v54  ;;  %v1131_v57 = vmul.f32 %v1473_v55, %v1067_v12 }
0x166b   :  { %1165 = vst.msk [vmem:[%s1806_s6] sm:$0xff] %vm185_vm2, %v1157_v56  ;;  %v1145_v58 = vmul.f32 %v1739_v13, %v1131_v57 }
0x166d   :  { %v1159_v59 = vadd.f32 %v1744_v53, %v1145_v58 }
0x166f   :  { %1167 = vst.msk [vmem:[%s1806_s6 + $0x10] sm:$0xff] %vm185_vm2, %v1159_v59 }
0x1692   :  { %v1055_v60 = vpop.xlane.xlu0 %1054 }
0x1693   :  { %v1064_v62 = vmul.f32 0.03125, %v1055_v60 }
0x1695   :  { %v1072_v2 = vsub.f32 %v1031_v20, %v1064_v62 }
0x1697   :  { %v1080_v3 = vmul.f32 %v1072_v2, %v1072_v2 }
0x1699   :  { %v1102_v5 = vsel %vm185_vm2, %v1080_v3, 0.0 }
0x169a   :  { %1103 = vadd.xlane.f32.xlu0 %v1102_v5 }
0x16cf   :  { %v1086_v6 = vpop.xlane.xlu0 %1085 }
0x16d0   :  { %v1106_v7 = vmul.f32 0.03125, %v1086_v6 }
0x16d2   :  { %v1114_v9 = vadd.f32 1e-05, %v1106_v7 }
0x16d3   :  { %v1095_v10 = vpop.xlane.xlu1 %1094  ;;  %v1092_v11 = vpop.xlane.xlu0 %1091 }
0x16d4   :  { %1474 = vrsqrt.f32 %v1114_v9  ;;  %v1109_v14 = vmul.f32 0.03125, %v1095_v10  ;;  %v1108_v8 = vmul.f32 0.03125, %v1092_v11 }
0x16d6   :  { %v1117_v15 = vadd.f32 1e-05, %v1109_v14  ;;  %v1116_v4 = vadd.f32 1e-05, %v1108_v8 }
0x16d7   :  { %v1101_v0 = vpop.xlane.xlu1 %1100  ;;  %v1098_v16 = vpop.xlane.xlu0 %1097 }
0x16d8   :  { %1476 = vrsqrt.f32 %v1117_v15  ;;  %v1111_v12 = vmul.f32 0.03125, %v1101_v0  ;;  %v1110_v61 = vmul.f32 0.03125, %v1098_v16 }
0x16d9   :  { %1478 = vrsqrt.f32 %v1116_v4 }
0x16da   :  { %v1119_v17 = vadd.f32 1e-05, %v1111_v12  ;;  %v1118_v18 = vadd.f32 1e-05, %v1110_v61 }
0x16dc   :  { %1480 = vrsqrt.f32 %v1119_v17 }
0x16dd   :  { %1482 = vrsqrt.f32 %v1118_v18 }
0x16de   :  { %v1475_v19 = vpop.eup %1474 }
0x16df   :  { %v1130_v20 = vmul.f32 %v1475_v19, %v1713_v29 }
0x16e1   :  { %v1144_v21 = vmul.f32 %v1739_v13, %v1130_v20 }
0x16e2   :  { %v1477_v22 = vpop.eup %1476 }
0x16e3   :  { %v1479_v23 = vpop.eup %1478  ;;  %v1158_v24 = vadd.f32 %v1744_v53, %v1144_v21  ;;  %v1133_v25 = vmul.f32 %v1477_v22, %v1719_v34 }
0x16e4   :  { %v1132_v26 = vmul.f32 %v1479_v23, %v1711_v27 }
0x16e5   :  { %1166 = vst.msk [vmem:[%s1806_s6 + $0x8] sm:$0xff] %vm185_vm2, %v1158_v24  ;;  %v1147_v28 = vmul.f32 %v1739_v13, %v1133_v25 }
0x16e6   :  { %v1481_v30 = vpop.eup %1480  ;;  %v1146_v29 = vmul.f32 %v1739_v13, %v1132_v26 }
0x16e7   :  { %v1483_v31 = vpop.eup %1482  ;;  %v1161_v32 = vadd.f32 %v1744_v53, %v1147_v28  ;;  %v1135_v1 = vmul.f32 %v1481_v30, %v1726_v39 }
0x16e8   :  { %v1160_v35 = vadd.f32 %v1744_v53, %v1146_v29  ;;  %v1134_v34 = vmul.f32 %v1483_v31, %v1717_v33 }
0x16e9   :  { %1169 = vst.msk [vmem:[%s1806_s6 + $0x20] sm:$0xff] %vm185_vm2, %v1161_v32  ;;  %v1149_v27 = vmul.f32 %v1739_v13, %v1135_v1 }
0x16ea   :  { %1168 = vst.msk [vmem:[%s1806_s6 + $0x18] sm:$0xff] %vm185_vm2, %v1160_v35  ;;  %v1148_v36 = vmul.f32 %v1739_v13, %v1134_v34 }
0x16eb   :  { %v1163_v37 = vadd.f32 %v1744_v53, %v1149_v27 }
0x16ec   :  { %v1162_v38 = vadd.f32 %v1744_v53, %v1148_v36 }
0x16ed   :  { %1171 = vst.msk [vmem:[%s1806_s6 + $0x30] sm:$0xff] %vm185_vm2, %v1163_v37 }
0x16ee   :  { %1170 = vst.msk [vmem:[%s1806_s6 + $0x28] sm:$0xff] %vm185_vm2, %v1162_v38 }
0x1727   :  { %v1104_v33 = vpop.xlane.xlu0 %1103 }
0x1728   :  { %v1112_v39 = vmul.f32 0.03125, %v1104_v33 }
0x172a   :  { %v1120_v40 = vadd.f32 1e-05, %v1112_v39 }
0x172c   :  { %1484 = vrsqrt.f32 %v1120_v40 }
0x1736   :  { %v1485_v41 = vpop.eup %1484 }
0x1737   :  { %v1136_v42 = vmul.f32 %v1485_v41, %v1072_v2 }
0x1739   :  { %v1150_v43 = vmul.f32 %v1739_v13, %v1136_v42 }
0x173b   :  { %v1164_v44 = vadd.f32 %v1744_v53, %v1150_v43 }
0x173d   :  { %1172 = vst.msk [vmem:[%s1806_s6 + $0x38] sm:$0xff] %vm185_vm2, %v1164_v44 }

// kernel: layer_norm_lstm.3
= control target key start
LH: loop header
LB: loop body
LE: loop exit
PB: predicated region body
PF: predicated region fallthrough
CT: control target
= control target key end

     0   :  { %v1497_v2 = vmov 0.0|0.0   ;;  %vm48_vm0 = vcmask 261120   ;;  %vm1498_vm1 = vmmov 0   ;;  %v1499_v4 = vmov 0.0   ;;  %s1500_s17 = smov 64   ;;  %s1817_s1 = inlined_call_operand.vmem [shape: f32[32,128], index: 1, kind: input, shape index: {}]   ;;  %s1818_s2 = inlined_call_operand.vmem [shape: f32[32,128], index: 2, kind: input, shape index: {}]   ;;  %s1819_s0 = inlined_call_operand.vmem [shape: f32[8,8,32], index: 0, kind: input, shape index: {}]   ;;  %s1820_s3 = inlined_call_operand.vmem [shape: f32[1,128], index: 3, kind: input, shape index: {}]   ;;  %s1821_s4 = inlined_call_operand.vmem [shape: f32[1,32], index: 4, kind: input, shape index: {}]   ;;  %s1822_s5 = inlined_call_operand.vmem [shape: f32[1,32], index: 5, kind: input, shape index: {}]   ;;  %s1823_s6 = inlined_call_operand.vmem [shape: f32[8,8,32], index: 6, kind: output, shape index: {}]  }
   0x1   :  { %v23_v0 = vld [vmem:[%s1817_s1] sm:$0xff]  ;;  %v24_v1 = vld [vmem:[%s1817_s1 + $0x8] sm:$0xff]  ;;  %1364 = vmatprep.subr.bf16.mxu1 %v1497_v2  ;;  %1276 = vmatprep.mubr.msk.f32.mxu1 %vm1498_vm1, %v1499_v4  ;;  %v25_v7 = vld [vmem:[%s1817_s1 + $0x10] sm:$0xff] }
   0x2   :  { %v27_v3 = vld [vmem:[%s1818_s2] sm:$0xff]  ;;  %v1356_v5 = vpack.c.bf16 %v24_v1, %v23_v0  ;;  %v28_v6 = vld [vmem:[%s1818_s2 + $0x8] sm:$0xff]  ;;  %v26_v8 = vld [vmem:[%s1817_s1 + $0x18] sm:$0xff] }
   0x3   :  { %v1558_v9 = vpack.c.bf16 %v28_v6, %v27_v3  ;;  %v1360_v10 = vpack.c.bf16 %v26_v8, %v25_v7  ;;  %v34_v11 = vld [vmem:[%s1819_s0] sm:$0xff]  ;;  %v29_v12 = vld [vmem:[%s1818_s2 + $0x10] sm:$0xff]  ;;  %v30_v13 = vld [vmem:[%s1818_s2 + $0x18] sm:$0xff] }
   0x4   :  { %1357 = vmatprep.subr.bf16.mxu0 %v1356_v5  ;;  %1256 = vmatprep.mubr.msk.f32.mxu0 %vm48_vm0, %v34_v11  ;;  %v1571_v14 = vpack.c.bf16 %v30_v13, %v29_v12  ;;  %v35_v15 = vld [vmem:[%s1819_s0 + $0x8] sm:$0xff]  ;;  %v1595_v16 = vld [vmem:[%s1820_s3] ss:$0 sm:$0xff]  ;;  %s1501_s3 = smov 32   ;;  %v36_v53 = vld [vmem:[%s1819_s0 + $0x10] sm:$0xff] }
   0x5   :  { %1359 = vmatpush3.bf16.msra.mxu0 %v1356_v5  ;;  %1366 = vmatpush3.bf16.msra.mxu1 %v1558_v9  ;;  %v37_v54 = vld [vmem:[%s1819_s0 + $0x18] sm:$0xff]  ;;  %v38_v55 = vld [vmem:[%s1819_s0 + $0x20] sm:$0xff]  ;;  %v39_v56 = vld [vmem:[%s1819_s0 + $0x28] sm:$0xff] }
   0x6   :  { %1361 = vmatprep.subr.bf16.mxu0 %v1360_v10  ;;  %1367 = vmatprep.subr.bf16.mxu1 %v1497_v2  ;;  %v40_v57 = vld [vmem:[%s1819_s0 + $0x30] sm:$0xff]  ;;  %v41_v58 = vld [vmem:[%s1819_s0 + $0x38] sm:$0xff] }
   0x9   :  { %1363 = vmatpush3.bf16.msra.mxu0 %v1360_v10  ;;  %1369 = vmatpush3.bf16.msra.mxu1 %v1571_v14 }
   0xa   :  { %1370 = vmatprep.subr.bf16.mxu1 %v1497_v2  ;;  %1376 = vmatprep.subr.bf16.mxu0 %v1497_v2 }
   0xc   :  { %1257 = vmatmul.mubr.msk.f32.vlgmr.msra.gmra.mrb[0].mxu0 %vm48_vm0, %v35_v15  ;;  %1277 = vmatmul.mubr.f32.vlgmr.msra.gmra.mrb[0].mxu1 %v1499_v4 }
   0xd   :  { %1372 = vmatpush3.bf16.msra.mxu1 %v1558_v9  ;;  %1287 = vmatprep.mubr.msk.f32.mxu1 %vm1498_vm1, %v1499_v4 }
   0xe   :  { %1373 = vmatprep.subr.bf16.mxu1 %v1497_v2  ;;  %1378 = vmatpush3.bf16.msra.mxu0 %v1558_v9 }
   0xf   :  { %1379 = vmatprep.subr.bf16.mxu0 %v1497_v2  ;;  %1259 = vmatprep.mubr.msk.f32.mxu0 %vm48_vm0, %v36_v53 }
  0x10   :  { %1260 = vmatmul.mubr.msk.f32.gmra.mrb[2].mxu0 %vm48_vm0, %v37_v54 }
  0x11   :  { %1375 = vmatpush3.bf16.msra.mxu1 %v1571_v14  ;;  %1262 = vmatprep.mubr.msk.f32.mxu0 %vm48_vm0, %v38_v55 }
  0x12   :  { %1381 = vmatpush3.bf16.msra.mxu0 %v1571_v14  ;;  %1382 = vmatprep.subr.bf16.mxu1 %v1497_v2 }
  0x13   :  { %1388 = vmatprep.subr.bf16.mxu0 %v1497_v2 }
  0x14   :  { %1263 = vmatmul.mubr.msk.f32.gmra.mrb[4].mxu0 %vm48_vm0, %v39_v56 }
  0x15   :  { %1265 = vmatprep.mubr.msk.f32.mxu0 %vm48_vm0, %v40_v57 }
  0x18   :  { %1266 = vmatmul.mubr.msk.f32.gmra.mrb[6].mxu0 %vm48_vm0, %v41_v58 }
  0x19   :  { %1298 = vmatprep.mubr.msk.f32.mxu0 %vm1498_vm1, %v1499_v4 }
  0xdf   :  { %v1258_v17 = vpop.f32.mrb[0].mxu0  ;;  %v256_v18 = vpop.f32.mrb[0].mxu1 }
  0xe0   :  { %v139_v19 = vpop.f32.mrb[1].mxu0  ;;  %v1278_v20 = vpop.f32.mrb[1].mxu1  ;;  %v145_v38 = vadd.f32 %v1258_v17, %v1595_v16 }
  0xe1   :  { %v140_v21 = vadd.f32 %v1595_v16, %v139_v19 }
  0xe3   :  { %v260_v22 = vadd.f32 %v256_v18, %v140_v21  ;;  %v1261_v62 = vpop.f32.mrb[2].mxu0 }
  0xe4   :  { %v149_v63 = vpop.f32.mrb[3].mxu0 }
  0xe5   :  { %1417 = vtanh.f32 %v260_v22  ;;  %v261_v24 = vsub.f32 0.0, %v260_v22  ;;  %v150_v7 = vadd.f32 %v1595_v16, %v149_v63 }
  0xe7   :  { %v262_v25 = vmul.f32 1.442695, %v261_v24  ;;  %v1641_v0 = vpop.f32.mrb[4].mxu0 }
  0xe8   :  { %v1643_v1 = vpop.f32.mrb[5].mxu0 }
  0xe9   :  { %1419 = vpow2.f32 %v262_v25 }
  0xeb   :  { %v1645_v3 = vpop.f32.mrb[6].mxu0 }
  0xec   :  { %v1647_v5 = vpop.f32.mrb[7].mxu0 }
  0xef   :  { %v1418_v23 = vpop.eup %1417 }
  0xf0   :  { %270 = vrot.lane.b32.xlu0 %v1418_v23, %s1500_s17 }
  0xf3   :  { %v1420_v26 = vpop.eup %1419 }
  0xf4   :  { %v264_v27 = vadd.f32 1.0, %v1420_v26 }
  0xf6   :  { %1421 = vrcp.f32 %v264_v27 }
 0x100   :  { %v1422_v28 = vpop.eup %1421 }
 0x101   :  { %v268_v31 = vmul.f32 0.0, %v1422_v28 }
 0x162   :  { %v271_v29 = vpop.permute.xlu0 %270 }
 0x163   :  { %v273_v30 = vmul.f32 %v1422_v28, %v271_v29  ;;  %v155_v29 = vadd.f32 %v1261_v62, %v1595_v16 }
 0x165   :  { %275 = vrot.lane.b32.xlu0 %v273_v30, %s1501_s3 }
 0x1d7   :  { %v276_v32 = vpop.permute.xlu0 %275 }
 0x1d8   :  { %v278_v33 = vadd.f32 %v276_v32, %v268_v31 }
 0x1da   :  { %1423 = vtanh.f32 %v278_v33 }
 0x1e4   :  { %v1424_v34 = vpop.eup %1423 }
 0x1e5   :  { %281 = vrot.lane.b32.xlu1 %v1424_v34, %s1500_s17 }
 0x257   :  { %v282_v35 = vpop.permute.xlu1 %281 }
 0x258   :  { %v284_v36 = vmul.f32 %v1422_v28, %v282_v35 }
 0x25a   :  { %286 = vrot.lane.b32.xlu1 %v284_v36, %s1501_s3 }
 0x2cc   :  { %v287_v37 = vpop.permute.xlu1 %286 }
 0x2cd   :  { %289 = vst.msk [vmem:[#allocation3] sm:$0xff] %vm48_vm0, %v287_v37  ;;  %1288 = vmatmul.mubr.msk.f32.vlgmr.msra.gmra.mrb[2].mxu1 %vm48_vm0, %v287_v37 }
 0x2ce   :  { %1384 = vmatpush3.bf16.msra.mxu1 %v1558_v9  ;;  %1309 = vmatprep.mubr.msk.f32.mxu1 %vm1498_vm1, %v1499_v4 }
 0x2cf   :  { %1385 = vmatprep.subr.bf16.mxu1 %v1497_v2 }
 0x2d2   :  { %1387 = vmatpush3.bf16.msra.mxu1 %v1571_v14 }
 0x2d3   :  { %1394 = vmatprep.subr.bf16.mxu1 %v1497_v2 }
 0x3a0   :  { %v360_v39 = vpop.f32.mrb[2].mxu1 }
 0x3a1   :  { %v364_v40 = vadd.f32 %v360_v39, %v145_v38  ;;  %v1289_v41 = vpop.f32.mrb[3].mxu1 }
 0x3a3   :  { %1425 = vtanh.f32 %v364_v40  ;;  %v365_v43 = vsub.f32 0.0, %v364_v40 }
 0x3a5   :  { %v366_v44 = vmul.f32 1.442695, %v365_v43 }
 0x3a7   :  { %1427 = vpow2.f32 %v366_v44 }
 0x3ad   :  { %v1426_v42 = vpop.eup %1425 }
 0x3ae   :  { %374 = vrot.lane.b32.xlu0 %v1426_v42, %s1500_s17 }
 0x3b1   :  { %v1428_v45 = vpop.eup %1427 }
 0x3b2   :  { %v368_v46 = vadd.f32 1.0, %v1428_v45 }
 0x3b4   :  { %1429 = vrcp.f32 %v368_v46 }
 0x3be   :  { %v1430_v47 = vpop.eup %1429 }
 0x3bf   :  { %v372_v50 = vmul.f32 %v1430_v47, %v278_v33 }
 0x420   :  { %v375_v48 = vpop.permute.xlu0 %374 }
 0x421   :  { %v377_v49 = vmul.f32 %v1430_v47, %v375_v48  ;;  %v160_v48 = vadd.f32 %v1595_v16, %v1643_v1 }
 0x423   :  { %379 = vrot.lane.b32.xlu1 %v377_v49, %s1501_s3 }
 0x495   :  { %v380_v51 = vpop.permute.xlu1 %379 }
 0x496   :  { %v382_v52 = vadd.f32 %v380_v51, %v372_v50 }
 0x498   :  { %1431 = vtanh.f32 %v382_v52 }
 0x4a2   :  { %v1432_v59 = vpop.eup %1431 }
 0x4a3   :  { %385 = vrot.lane.b32.xlu0 %v1432_v59, %s1500_s17 }
 0x515   :  { %v386_v60 = vpop.permute.xlu0 %385 }
 0x516   :  { %v388_v61 = vmul.f32 %v1430_v47, %v386_v60 }
 0x518   :  { %390 = vrot.lane.b32.xlu1 %v388_v61, %s1501_s3 }
 0x58a   :  { %v391_v6 = vpop.permute.xlu1 %390 }
 0x58b   :  { %394 = vst.msk [vmem:[#allocation3 + $0x8] sm:$0xff] %vm48_vm0, %v391_v6  ;;  %1299 = vmatmul.mubr.msk.f32.vlgmr.msra.gmra.mrb[8].mxu0 %vm48_vm0, %v391_v6 }
 0x58c   :  { %1390 = vmatpush3.bf16.msra.mxu0 %v1558_v9  ;;  %1320 = vmatprep.mubr.msk.f32.mxu0 %vm1498_vm1, %v1499_v4 }
 0x58d   :  { %1391 = vmatprep.subr.bf16.mxu0 %v1497_v2 }
 0x590   :  { %1393 = vmatpush3.bf16.msra.mxu0 %v1571_v14 }
 0x591   :  { %1400 = vmatprep.subr.bf16.mxu0 %v1497_v2 }
 0x65e   :  { %v465_v8 = vpop.f32.mrb[8].mxu0 }
 0x65f   :  { %v469_v10 = vadd.f32 %v465_v8, %v150_v7  ;;  %v1300_v11 = vpop.f32.mrb[9].mxu0  ;;  %v165_v8 = vadd.f32 %v1641_v0, %v1595_v16 }
 0x661   :  { %1433 = vtanh.f32 %v469_v10  ;;  %v470_v13 = vsub.f32 0.0, %v469_v10 }
 0x663   :  { %v471_v15 = vmul.f32 1.442695, %v470_v13 }
 0x665   :  { %1435 = vpow2.f32 %v471_v15 }
 0x66b   :  { %v1434_v12 = vpop.eup %1433 }
 0x66c   :  { %479 = vrot.lane.b32.xlu0 %v1434_v12, %s1500_s17 }
 0x66f   :  { %v1436_v17 = vpop.eup %1435 }
 0x670   :  { %v473_v18 = vadd.f32 1.0, %v1436_v17 }
 0x672   :  { %1437 = vrcp.f32 %v473_v18 }
 0x67c   :  { %v1438_v19 = vpop.eup %1437 }
 0x67d   :  { %v477_v22 = vmul.f32 %v1438_v19, %v382_v52 }
 0x6de   :  { %v480_v20 = vpop.permute.xlu0 %479 }
 0x6df   :  { %v482_v21 = vmul.f32 %v1438_v19, %v480_v20 }
 0x6e1   :  { %484 = vrot.lane.b32.xlu1 %v482_v21, %s1501_s3 }
 0x753   :  { %v485_v23 = vpop.permute.xlu1 %484 }
 0x754   :  { %v487_v24 = vadd.f32 %v485_v23, %v477_v22 }
 0x756   :  { %1439 = vtanh.f32 %v487_v24 }
 0x760   :  { %v1440_v25 = vpop.eup %1439 }
 0x761   :  { %490 = vrot.lane.b32.xlu0 %v1440_v25, %s1500_s17  ;;  %v170_v25 = vadd.f32 %v1595_v16, %v1647_v5 }
 0x7d3   :  { %v491_v26 = vpop.permute.xlu0 %490 }
 0x7d4   :  { %v493_v27 = vmul.f32 %v1438_v19, %v491_v26 }
 0x7d6   :  { %495 = vrot.lane.b32.xlu1 %v493_v27, %s1501_s3 }
 0x848   :  { %v496_v28 = vpop.permute.xlu1 %495 }
 0x849   :  { %499 = vst.msk [vmem:[#allocation3 + $0x10] sm:$0xff] %vm48_vm0, %v496_v28  ;;  %1310 = vmatmul.mubr.msk.f32.vlgmr.msra.gmra.mrb[4].mxu1 %vm48_vm0, %v496_v28 }
 0x84a   :  { %1396 = vmatpush3.bf16.msra.mxu1 %v1558_v9  ;;  %1331 = vmatprep.mubr.msk.f32.mxu1 %vm1498_vm1, %v1499_v4 }
 0x84b   :  { %1397 = vmatprep.subr.bf16.mxu1 %v1497_v2 }
 0x84e   :  { %1399 = vmatpush3.bf16.msra.mxu1 %v1571_v14 }
 0x84f   :  { %1406 = vmatprep.subr.bf16.mxu1 %v1497_v2 }
 0x91c   :  { %v570_v30 = vpop.f32.mrb[4].mxu1 }
 0x91d   :  { %v574_v31 = vadd.f32 %v570_v30, %v155_v29  ;;  %v1311_v32 = vpop.f32.mrb[5].mxu1 }
 0x91f   :  { %1441 = vtanh.f32 %v574_v31  ;;  %v575_v34 = vsub.f32 0.0, %v574_v31 }
 0x921   :  { %v576_v35 = vmul.f32 1.442695, %v575_v34 }
 0x923   :  { %1443 = vpow2.f32 %v576_v35 }
 0x929   :  { %v1442_v33 = vpop.eup %1441 }
 0x92a   :  { %584 = vrot.lane.b32.xlu0 %v1442_v33, %s1500_s17 }
 0x92d   :  { %v1444_v36 = vpop.eup %1443 }
 0x92e   :  { %v578_v37 = vadd.f32 1.0, %v1444_v36 }
 0x930   :  { %1445 = vrcp.f32 %v578_v37 }
 0x93a   :  { %v1446_v38 = vpop.eup %1445 }
 0x93b   :  { %v582_v41 = vmul.f32 %v1446_v38, %v487_v24 }
 0x99c   :  { %v585_v39 = vpop.permute.xlu0 %584 }
 0x99d   :  { %v587_v40 = vmul.f32 %v1446_v38, %v585_v39 }
 0x99f   :  { %589 = vrot.lane.b32.xlu1 %v587_v40, %s1501_s3 }
 0xa11   :  { %v590_v42 = vpop.permute.xlu1 %589 }
 0xa12   :  { %v592_v43 = vadd.f32 %v590_v42, %v582_v41 }
 0xa14   :  { %1447 = vtanh.f32 %v592_v43 }
 0xa1e   :  { %v1448_v44 = vpop.eup %1447 }
 0xa1f   :  { %595 = vrot.lane.b32.xlu0 %v1448_v44, %s1500_s17 }
 0xa91   :  { %v596_v45 = vpop.permute.xlu0 %595 }
 0xa92   :  { %v598_v46 = vmul.f32 %v1446_v38, %v596_v45 }
 0xa94   :  { %600 = vrot.lane.b32.xlu1 %v598_v46, %s1501_s3 }
 0xb06   :  { %v601_v47 = vpop.permute.xlu1 %600 }
 0xb07   :  { %604 = vst.msk [vmem:[#allocation3 + $0x18] sm:$0xff] %vm48_vm0, %v601_v47  ;;  %1321 = vmatmul.mubr.msk.f32.vlgmr.msra.gmra.mrb[10].mxu0 %vm48_vm0, %v601_v47 }
 0xb08   :  { %1402 = vmatpush3.bf16.msra.mxu0 %v1558_v9  ;;  %1342 = vmatprep.mubr.msk.f32.mxu0 %vm1498_vm1, %v1499_v4 }
 0xb09   :  { %1403 = vmatprep.subr.bf16.mxu0 %v1497_v2 }
 0xb0c   :  { %1405 = vmatpush3.bf16.msra.mxu0 %v1571_v14 }
 0xbda   :  { %v675_v49 = vpop.f32.mrb[10].mxu0 }
 0xbdb   :  { %v679_v50 = vadd.f32 %v675_v49, %v160_v48  ;;  %v1322_v51 = vpop.f32.mrb[11].mxu0 }
 0xbdd   :  { %1449 = vtanh.f32 %v679_v50  ;;  %v680_v53 = vsub.f32 0.0, %v679_v50 }
 0xbdf   :  { %v681_v54 = vmul.f32 1.442695, %v680_v53 }
 0xbe1   :  { %1451 = vpow2.f32 %v681_v54 }
 0xbe7   :  { %v1450_v52 = vpop.eup %1449 }
 0xbe8   :  { %689 = vrot.lane.b32.xlu0 %v1450_v52, %s1500_s17 }
 0xbeb   :  { %v1452_v55 = vpop.eup %1451 }
 0xbec   :  { %v683_v56 = vadd.f32 1.0, %v1452_v55 }
 0xbee   :  { %1453 = vrcp.f32 %v683_v56 }
 0xbf8   :  { %v1454_v57 = vpop.eup %1453 }
 0xbf9   :  { %v687_v60 = vmul.f32 %v1454_v57, %v592_v43  ;;  %v175_v43 = vadd.f32 %v1645_v3, %v1595_v16 }
 0xc5a   :  { %v690_v58 = vpop.permute.xlu0 %689 }
 0xc5b   :  { %v692_v59 = vmul.f32 %v1454_v57, %v690_v58 }
 0xc5d   :  { %694 = vrot.lane.b32.xlu1 %v692_v59, %s1501_s3  ;;  %v1027_v59 = vld [vmem:[#allocation3 + $0x10] sm:$0xff] }
 0xccf   :  { %v695_v61 = vpop.permute.xlu1 %694 }
 0xcd0   :  { %v697_v62 = vadd.f32 %v695_v61, %v687_v60  ;;  %v1039_v60 = vsel %vm48_vm0, %v1027_v59, 0.0  ;;  %v1028_v61 = vld [vmem:[#allocation3 + $0x18] sm:$0xff] }
 0xcd2   :  { %1455 = vtanh.f32 %v697_v62 }
 0xcdc   :  { %v1456_v63 = vpop.eup %1455 }
 0xcdd   :  { %700 = vrot.lane.b32.xlu0 %v1456_v63, %s1500_s17 }
 0xd4f   :  { %v701_v1 = vpop.permute.xlu0 %700 }
 0xd50   :  { %v703_v6 = vmul.f32 %v1454_v57, %v701_v1  ;;  %v1025_v57 = vld [vmem:[#allocation3] sm:$0xff] }
 0xd51   :  { %v1033_v58 = vsel %vm48_vm0, %v1025_v57, 0.0 }
 0xd52   :  { %705 = vrot.lane.b32.xlu1 %v703_v6, %s1501_s3 }
 0xdc4   :  { %v706_v7 = vpop.permute.xlu1 %705 }
 0xdc5   :  { %709 = vst.msk [vmem:[#allocation3 + $0x20] sm:$0xff] %vm48_vm0, %v706_v7  ;;  %1332 = vmatmul.mubr.msk.f32.vlgmr.msra.gmra.mrb[6].mxu1 %vm48_vm0, %v706_v7 }
 0xdc6   :  { %1408 = vmatpush3.bf16.msra.mxu1 %v1558_v9  ;;  %1353 = vmatprep.mubr.msk.f32.mxu1 %vm1498_vm1, %v1499_v4 }
 0xdc7   :  { %1409 = vmatprep.subr.bf16.mxu1 %v1497_v2 }
 0xdca   :  { %1411 = vmatpush3.bf16.msra.mxu1 %v1571_v14 }
 0xe98   :  { %v780_v10 = vpop.f32.mrb[6].mxu1 }
 0xe99   :  { %v784_v11 = vadd.f32 %v780_v10, %v165_v8  ;;  %v1333_v12 = vpop.f32.mrb[7].mxu1  ;;  %v1026_v8 = vld [vmem:[#allocation3 + $0x8] sm:$0xff] }
 0xe9a   :  { %v1036_v10 = vsel %vm48_vm0, %v1026_v8, 0.0 }
 0xe9b   :  { %1457 = vtanh.f32 %v784_v11  ;;  %v785_v15 = vsub.f32 0.0, %v784_v11  ;;  %v1029_v11 = vld [vmem:[#allocation3 + $0x20] sm:$0xff] }
 0xe9c   :  { %v1045_v12 = vsel %vm48_vm0, %v1029_v11, 0.0 }
 0xe9d   :  { %v786_v17 = vmul.f32 1.442695, %v785_v15 }
 0xe9f   :  { %1459 = vpow2.f32 %v786_v17 }
 0xea5   :  { %v1458_v13 = vpop.eup %1457 }
 0xea6   :  { %794 = vrot.lane.b32.xlu0 %v1458_v13, %s1500_s17 }
 0xea9   :  { %v1460_v9 = vpop.eup %1459 }
 0xeaa   :  { %v788_v18 = vadd.f32 1.0, %v1460_v9 }
 0xeac   :  { %1461 = vrcp.f32 %v788_v18 }
 0xeb6   :  { %v1462_v4 = vpop.eup %1461 }
 0xeb7   :  { %v792_v14 = vmul.f32 %v1462_v4, %v697_v62  ;;  %v1042_v62 = vsel %vm48_vm0, %v1028_v61, 0.0 }
 0xf18   :  { %v795_v2 = vpop.permute.xlu0 %794 }
 0xf19   :  { %v797_v19 = vmul.f32 %v1462_v4, %v795_v2 }
 0xf1b   :  { %799 = vrot.lane.b32.xlu1 %v797_v19, %s1501_s3 }
 0xf8d   :  { %v800_v0 = vpop.permute.xlu1 %799 }
 0xf8e   :  { %v802_v20 = vadd.f32 %v800_v0, %v792_v14 }
 0xf90   :  { %1463 = vtanh.f32 %v802_v20 }
 0xf9a   :  { %v1464_v21 = vpop.eup %1463 }
 0xf9b   :  { %805 = vrot.lane.b32.xlu0 %v1464_v21, %s1500_s17 }
0x100d   :  { %v806_v22 = vpop.permute.xlu0 %805 }
0x100e   :  { %v808_v23 = vmul.f32 %v1462_v4, %v806_v22 }
0x1010   :  { %810 = vrot.lane.b32.xlu1 %v808_v23, %s1501_s3 }
0x1082   :  { %v811_v24 = vpop.permute.xlu1 %810 }
0x1083   :  { %814 = vst.msk [vmem:[#allocation3 + $0x28] sm:$0xff] %vm48_vm0, %v811_v24  ;;  %1343 = vmatmul.mubr.msk.f32.vlgmr.msra.gmra.mrb[12].mxu0 %vm48_vm0, %v811_v24 }
0x108a   :  { %v1030_v63 = vld [vmem:[#allocation3 + $0x28] sm:$0xff] }
0x108b   :  { %v1048_v1 = vsel %vm48_vm0, %v1030_v63, 0.0 }
0x1156   :  { %v885_v26 = vpop.f32.mrb[12].mxu0 }
0x1157   :  { %v889_v27 = vadd.f32 %v885_v26, %v170_v25  ;;  %v1344_v28 = vpop.f32.mrb[13].mxu0 }
0x1159   :  { %1465 = vtanh.f32 %v889_v27  ;;  %v890_v30 = vsub.f32 0.0, %v889_v27 }
0x115b   :  { %v891_v31 = vmul.f32 1.442695, %v890_v30 }
0x115d   :  { %1467 = vpow2.f32 %v891_v31 }
0x1163   :  { %v1466_v29 = vpop.eup %1465 }
0x1164   :  { %899 = vrot.lane.b32.xlu0 %v1466_v29, %s1500_s17 }
0x1167   :  { %v1468_v32 = vpop.eup %1467 }
0x1168   :  { %v893_v33 = vadd.f32 1.0, %v1468_v32 }
0x116a   :  { %1469 = vrcp.f32 %v893_v33 }
0x1174   :  { %v1470_v34 = vpop.eup %1469 }
0x1175   :  { %v897_v37 = vmul.f32 %v1470_v34, %v802_v20 }
0x11d6   :  { %v900_v35 = vpop.permute.xlu0 %899 }
0x11d7   :  { %v902_v36 = vmul.f32 %v1470_v34, %v900_v35 }
0x11d9   :  { %904 = vrot.lane.b32.xlu1 %v902_v36, %s1501_s3 }
0x124b   :  { %v905_v5 = vpop.permute.xlu1 %904 }
0x124c   :  { %v907_v38 = vadd.f32 %v905_v5, %v897_v37 }
0x124e   :  { %1471 = vtanh.f32 %v907_v38 }
0x1258   :  { %v1472_v39 = vpop.eup %1471 }
0x1259   :  { %910 = vrot.lane.b32.xlu0 %v1472_v39, %s1500_s17 }
0x12cb   :  { %v911_v40 = vpop.permute.xlu0 %910 }
0x12cc   :  { %v913_v41 = vmul.f32 %v1470_v34, %v911_v40 }
0x12ce   :  { %915 = vrot.lane.b32.xlu1 %v913_v41, %s1501_s3 }
0x1340   :  { %v916_v42 = vpop.permute.xlu1 %915 }
0x1341   :  { %919 = vst.msk [vmem:[#allocation3 + $0x30] sm:$0xff] %vm48_vm0, %v916_v42  ;;  %1354 = vmatmul.mubr.msk.f32.vlgmr.msra.gmra.mrb[8].mxu1 %vm48_vm0, %v916_v42 }
0x1348   :  { %v1031_v13 = vld [vmem:[#allocation3 + $0x30] sm:$0xff] }
0x1349   :  { %v1051_v15 = vsel %vm48_vm0, %v1031_v13, 0.0 }
0x1414   :  { %v990_v44 = vpop.f32.mrb[8].mxu1 }
0x1415   :  { %v994_v45 = vadd.f32 %v990_v44, %v175_v43  ;;  %v1355_v46 = vpop.f32.mrb[9].mxu1 }
0x1417   :  { %1473 = vtanh.f32 %v994_v45  ;;  %v995_v48 = vsub.f32 0.0, %v994_v45 }
0x1419   :  { %v996_v49 = vmul.f32 1.442695, %v995_v48 }
0x141b   :  { %1475 = vpow2.f32 %v996_v49 }
0x1421   :  { %v1474_v47 = vpop.eup %1473 }
0x1422   :  { %1004 = vrot.lane.b32.xlu0 %v1474_v47, %s1500_s17 }
0x1425   :  { %v1476_v50 = vpop.eup %1475 }
0x1426   :  { %v998_v51 = vadd.f32 1.0, %v1476_v50 }
0x1428   :  { %1477 = vrcp.f32 %v998_v51 }
0x1432   :  { %v1478_v52 = vpop.eup %1477 }
0x1433   :  { %v1002_v55 = vmul.f32 %v1478_v52, %v907_v38 }
0x1494   :  { %v1005_v53 = vpop.permute.xlu0 %1004 }
0x1495   :  { %v1007_v54 = vmul.f32 %v1478_v52, %v1005_v53 }
0x1497   :  { %1009 = vrot.lane.b32.xlu1 %v1007_v54, %s1501_s3 }
0x1509   :  { %v1010_v16 = vpop.permute.xlu1 %1009 }
0x150a   :  { %v1012_v3 = vadd.f32 %v1010_v16, %v1002_v55  ;;  %v1756_v16 = vld [vmem:[%s1821_s4] ss:$0 sm:$0xff] }
0x150c   :  { %1479 = vtanh.f32 %v1012_v3 }
0x1516   :  { %v1480_v56 = vpop.eup %1479 }
0x1517   :  { %1015 = vrot.lane.b32.xlu0 %v1480_v56, %s1500_s17  ;;  %v1761_v56 = vld [vmem:[%s1822_s5] ss:$0 sm:$0xff] }
0x1536   :  { %1034 = vadd.xlane.f32.xlu0 %v1033_v58 }
0x153a   :  { %1040 = vadd.xlane.f32.xlu0 %v1039_v60 }
0x153e   :  { %1043 = vadd.xlane.f32.xlu0 %v1042_v62 }
0x1542   :  { %1049 = vadd.xlane.f32.xlu0 %v1048_v1 }
0x1589   :  { %v1016_v6 = vpop.permute.xlu0 %1015 }
0x158a   :  { %v1018_v7 = vmul.f32 %v1478_v52, %v1016_v6 }
0x158c   :  { %1020 = vrot.lane.b32.xlu1 %v1018_v7, %s1501_s3 }
0x15b0   :  { %1037 = vadd.xlane.f32.xlu1 %v1036_v10 }
0x15b4   :  { %1046 = vadd.xlane.f32.xlu1 %v1045_v12 }
0x15b8   :  { %1052 = vadd.xlane.f32.xlu1 %v1051_v15 }
0x15c3   :  { %v1035_v17 = vpop.xlane.xlu0 %1034 }
0x15c4   :  { %v1058_v9 = vmul.f32 0.03125, %v1035_v17 }
0x15c6   :  { %v1066_v18 = vsub.f32 %v1025_v57, %v1058_v9 }
0x15c7   :  { %v1041_v4 = vpop.xlane.xlu0 %1040 }
0x15c8   :  { %v1060_v2 = vmul.f32 0.03125, %v1041_v4  ;;  %v1074_v19 = vmul.f32 %v1066_v18, %v1066_v18 }
0x15ca   :  { %v1068_v14 = vsub.f32 %v1027_v59, %v1060_v2  ;;  %v1082_v0 = vsel %vm48_vm0, %v1074_v19, 0.0 }
0x15cb   :  { %1083 = vadd.xlane.f32.xlu1 %v1082_v0  ;;  %v1044_v25 = vpop.xlane.xlu0 %1043 }
0x15cc   :  { %v1076_v20 = vmul.f32 %v1068_v14, %v1068_v14  ;;  %v1061_v26 = vmul.f32 0.03125, %v1044_v25 }
0x15ce   :  { %v1088_v21 = vsel %vm48_vm0, %v1076_v20, 0.0  ;;  %v1728_v30 = vsub.f32 %v1028_v61, %v1061_v26 }
0x15cf   :  { %1089 = vadd.xlane.f32.xlu1 %v1088_v21  ;;  %v1050_v27 = vpop.xlane.xlu0 %1049 }
0x15d0   :  { %v1063_v31 = vmul.f32 0.03125, %v1050_v27  ;;  %v1077_v38 = vmul.f32 %v1728_v30, %v1728_v30 }
0x15d2   :  { %v1734_v36 = vsub.f32 %v1030_v63, %v1063_v31  ;;  %v1091_v44 = vsel %vm48_vm0, %v1077_v38, 0.0 }
0x15d4   :  { %v1079_v45 = vmul.f32 %v1734_v36, %v1734_v36 }
0x15d6   :  { %v1097_v48 = vsel %vm48_vm0, %v1079_v45, 0.0 }
0x15fe   :  { %v1021_v22 = vpop.permute.xlu1 %1020 }
0x15ff   :  { %1024 = vst.msk [vmem:[#allocation3 + $0x38] sm:$0xff] %vm48_vm0, %v1021_v22 }
0x1606   :  { %v1032_v23 = vld [vmem:[#allocation3 + $0x38] sm:$0xff] }
0x1607   :  { %v1054_v24 = vsel %vm48_vm0, %v1032_v23, 0.0 }
0x1608   :  { %1055 = vadd.xlane.f32.xlu0 %v1054_v24 }
0x163d   :  { %v1038_v28 = vpop.xlane.xlu1 %1037 }
0x163e   :  { %v1059_v29 = vmul.f32 0.03125, %v1038_v28 }
0x1640   :  { %v1730_v32 = vsub.f32 %v1026_v8, %v1059_v29 }
0x1641   :  { %v1047_v33 = vpop.xlane.xlu1 %1046 }
0x1642   :  { %v1062_v34 = vmul.f32 0.03125, %v1047_v33  ;;  %v1075_v35 = vmul.f32 %v1730_v32, %v1730_v32 }
0x1644   :  { %v1736_v37 = vsub.f32 %v1029_v11, %v1062_v34  ;;  %v1085_v5 = vsel %vm48_vm0, %v1075_v35, 0.0 }
0x1645   :  { %v1053_v39 = vpop.xlane.xlu1 %1052  ;;  %1086 = vadd.xlane.f32.xlu0 %v1085_v5 }
0x1646   :  { %v1064_v40 = vmul.f32 0.03125, %v1053_v39  ;;  %v1078_v41 = vmul.f32 %v1736_v37, %v1736_v37 }
0x1648   :  { %v1743_v42 = vsub.f32 %v1031_v13, %v1064_v40  ;;  %v1094_v43 = vsel %vm48_vm0, %v1078_v41, 0.0 }
0x1649   :  { %1095 = vadd.xlane.f32.xlu1 %v1094_v43  ;;  %1092 = vadd.xlane.f32.xlu0 %v1091_v44 }
0x164a   :  { %v1080_v46 = vmul.f32 %v1743_v42, %v1743_v42 }
0x164c   :  { %v1100_v47 = vsel %vm48_vm0, %v1080_v46, 0.0 }
0x164d   :  { %1101 = vadd.xlane.f32.xlu1 %v1100_v47  ;;  %1098 = vadd.xlane.f32.xlu0 %v1097_v48 }
0x1658   :  { %v1084_v49 = vpop.xlane.xlu1 %1083 }
0x1659   :  { %v1106_v50 = vmul.f32 0.03125, %v1084_v49 }
0x165b   :  { %v1114_v51 = vadd.f32 1e-05, %v1106_v50 }
0x165c   :  { %v1090_v52 = vpop.xlane.xlu1 %1089 }
0x165d   :  { %1481 = vrsqrt.f32 %v1114_v51  ;;  %v1108_v53 = vmul.f32 0.03125, %v1090_v52 }
0x165f   :  { %v1116_v54 = vadd.f32 1e-05, %v1108_v53 }
0x1661   :  { %1483 = vrsqrt.f32 %v1116_v54 }
0x1667   :  { %v1482_v55 = vpop.eup %1481 }
0x1668   :  { %v1130_v3 = vmul.f32 %v1482_v55, %v1066_v18 }
0x166a   :  { %v1144_v57 = vmul.f32 %v1756_v16, %v1130_v3 }
0x166b   :  { %v1484_v58 = vpop.eup %1483 }
0x166c   :  { %v1158_v59 = vadd.f32 %v1761_v56, %v1144_v57  ;;  %v1132_v60 = vmul.f32 %v1484_v58, %v1068_v14 }
0x166e   :  { %1166 = vst.msk [vmem:[%s1823_s6] sm:$0xff] %vm48_vm0, %v1158_v59  ;;  %v1146_v61 = vmul.f32 %v1756_v16, %v1132_v60 }
0x1670   :  { %v1160_v62 = vadd.f32 %v1761_v56, %v1146_v61 }
0x1672   :  { %1168 = vst.msk [vmem:[%s1823_s6 + $0x10] sm:$0xff] %vm48_vm0, %v1160_v62 }
0x1695   :  { %v1056_v63 = vpop.xlane.xlu0 %1055 }
0x1696   :  { %v1065_v1 = vmul.f32 0.03125, %v1056_v63 }
0x1698   :  { %v1073_v6 = vsub.f32 %v1032_v23, %v1065_v1 }
0x169a   :  { %v1081_v7 = vmul.f32 %v1073_v6, %v1073_v6 }
0x169c   :  { %v1103_v8 = vsel %vm48_vm0, %v1081_v7, 0.0 }
0x169d   :  { %1104 = vadd.xlane.f32.xlu0 %v1103_v8 }
0x16d2   :  { %v1087_v10 = vpop.xlane.xlu0 %1086 }
0x16d3   :  { %v1107_v11 = vmul.f32 0.03125, %v1087_v10 }
0x16d5   :  { %v1115_v12 = vadd.f32 1e-05, %v1107_v11 }
0x16d6   :  { %v1096_v13 = vpop.xlane.xlu1 %1095  ;;  %v1093_v15 = vpop.xlane.xlu0 %1092 }
0x16d7   :  { %1485 = vrsqrt.f32 %v1115_v12  ;;  %v1110_v17 = vmul.f32 0.03125, %v1096_v13  ;;  %v1109_v9 = vmul.f32 0.03125, %v1093_v15 }
0x16d9   :  { %v1118_v18 = vadd.f32 1e-05, %v1110_v17  ;;  %v1117_v4 = vadd.f32 1e-05, %v1109_v9 }
0x16da   :  { %v1102_v2 = vpop.xlane.xlu1 %1101  ;;  %v1099_v19 = vpop.xlane.xlu0 %1098 }
0x16db   :  { %1487 = vrsqrt.f32 %v1118_v18  ;;  %v1112_v14 = vmul.f32 0.03125, %v1102_v2  ;;  %v1111_v0 = vmul.f32 0.03125, %v1099_v19 }
0x16dc   :  { %1489 = vrsqrt.f32 %v1117_v4 }
0x16dd   :  { %v1120_v20 = vadd.f32 1e-05, %v1112_v14  ;;  %v1119_v21 = vadd.f32 1e-05, %v1111_v0 }
0x16df   :  { %1491 = vrsqrt.f32 %v1120_v20 }
0x16e0   :  { %1493 = vrsqrt.f32 %v1119_v21 }
0x16e1   :  { %v1486_v22 = vpop.eup %1485 }
0x16e2   :  { %v1131_v23 = vmul.f32 %v1486_v22, %v1730_v32 }
0x16e4   :  { %v1145_v24 = vmul.f32 %v1756_v16, %v1131_v23 }
0x16e5   :  { %v1488_v25 = vpop.eup %1487 }
0x16e6   :  { %v1490_v26 = vpop.eup %1489  ;;  %v1159_v27 = vadd.f32 %v1761_v56, %v1145_v24  ;;  %v1134_v28 = vmul.f32 %v1488_v25, %v1736_v37 }
0x16e7   :  { %v1133_v29 = vmul.f32 %v1490_v26, %v1728_v30 }
0x16e8   :  { %1167 = vst.msk [vmem:[%s1823_s6 + $0x8] sm:$0xff] %vm48_vm0, %v1159_v27  ;;  %v1148_v31 = vmul.f32 %v1756_v16, %v1134_v28 }
0x16e9   :  { %v1492_v33 = vpop.eup %1491  ;;  %v1147_v32 = vmul.f32 %v1756_v16, %v1133_v29 }
0x16ea   :  { %v1494_v34 = vpop.eup %1493  ;;  %v1162_v35 = vadd.f32 %v1761_v56, %v1148_v31  ;;  %v1136_v5 = vmul.f32 %v1492_v33, %v1743_v42 }
0x16eb   :  { %v1161_v38 = vadd.f32 %v1761_v56, %v1147_v32  ;;  %v1135_v37 = vmul.f32 %v1494_v34, %v1734_v36 }
0x16ec   :  { %1170 = vst.msk [vmem:[%s1823_s6 + $0x20] sm:$0xff] %vm48_vm0, %v1162_v35  ;;  %v1150_v30 = vmul.f32 %v1756_v16, %v1136_v5 }
0x16ed   :  { %1169 = vst.msk [vmem:[%s1823_s6 + $0x18] sm:$0xff] %vm48_vm0, %v1161_v38  ;;  %v1149_v39 = vmul.f32 %v1756_v16, %v1135_v37 }
0x16ee   :  { %v1164_v40 = vadd.f32 %v1761_v56, %v1150_v30 }
0x16ef   :  { %v1163_v41 = vadd.f32 %v1761_v56, %v1149_v39 }
0x16f0   :  { %1172 = vst.msk [vmem:[%s1823_s6 + $0x30] sm:$0xff] %vm48_vm0, %v1164_v40 }
0x16f1   :  { %1171 = vst.msk [vmem:[%s1823_s6 + $0x28] sm:$0xff] %vm48_vm0, %v1163_v41 }
0x172a   :  { %v1105_v36 = vpop.xlane.xlu0 %1104 }
0x172b   :  { %v1113_v42 = vmul.f32 0.03125, %v1105_v36 }
0x172d   :  { %v1121_v43 = vadd.f32 1e-05, %v1113_v42 }
0x172f   :  { %1495 = vrsqrt.f32 %v1121_v43 }
0x1739   :  { %v1496_v44 = vpop.eup %1495 }
0x173a   :  { %v1137_v45 = vmul.f32 %v1496_v44, %v1073_v6 }
0x173c   :  { %v1151_v46 = vmul.f32 %v1756_v16, %v1137_v45 }
0x173e   :  { %v1165_v47 = vadd.f32 %v1761_v56, %v1151_v46 }
0x1740   :  { %1173 = vst.msk [vmem:[%s1823_s6 + $0x38] sm:$0xff] %vm48_vm0, %v1165_v47 }

</bundles_post_ra>
